<compile_context>
chip_gen: v7x
topology: tpu7x:2x2x1
jax: 0.10.0
libtpu: 0.0.40
codegen_flags: <defaults>
</compile_context>

<pallas_src>
import functools

import jax
import jax.numpy as jnp
import numpy as np
from jax import lax
from jax.experimental import pallas as pl
from jax.experimental.pallas import tpu as pltpu


# ----------------------------- host-side matrix construction -----------------------------

def _conv_matrices(w_oihw, scale, hin, win, stride):
    """3x3/pad1/stride conv as sum_dy R_dy @ X @ M_dy on (H, W*C) activations."""
    cout, cin, _, _ = w_oihw.shape
    ho = (hin - 1) // stride + 1
    wo = (win - 1) // stride + 1
    w = w_oihw * scale[:, None, None, None]      # fold BN scale into the weights
    ms, rs = [], []
    for dy in range(3):
        m = np.zeros((win * cin, wo * cout), np.float32)
        for j in range(wo):
            for dx in range(3):
                ws = stride * j - 1 + dx
                if 0 <= ws < win:
                    m[ws * cin:(ws + 1) * cin, j * cout:(j + 1) * cout] = w[:, :, dy, dx].T
        r = np.zeros((ho, hin), np.float32)
        for i in range(ho):
            hs = stride * i - 1 + dy
            if 0 <= hs < hin:
                r[i, hs] = 1.0
        ms.append(m)
        rs.append(r)
    return ms, rs, ho, wo


def _pool_matrices(hin, win, c):
    """AvgPool2d(3, 2, 1, count_include_pad=True) as R @ X @ M (the 1/9 folded into M)."""
    ho = (hin - 1) // 2 + 1
    wo = (win - 1) // 2 + 1
    m = np.zeros((win * c, wo * c), np.float32)
    for j in range(wo):
        for dx in range(3):
            ws = 2 * j - 1 + dx
            if 0 <= ws < win:
                for ch in range(c):
                    m[ws * c + ch, j * c + ch] = 1.0 / 9.0
    r = np.zeros((ho, hin), np.float32)
    for i in range(ho):
        for dy in range(3):
            hs = 2 * i - 1 + dy
            if 0 <= hs < hin:
                r[i, hs] = 1.0
    return m, r, ho, wo


def prepare_plan(params, in_channels, hin, win):
    """Build the per-layer matmul operators and pack them into 3 padded arrays."""
    convs, pools = [], []

    def conv_layer(p, hi, wi, ci, stride):
        w_np = np.asarray(p["w"], np.float32)
        sc = np.asarray(p["scale"], np.float32)
        sh = np.asarray(p["shift"], np.float32)
        ms, rs, ho, wo = _conv_matrices(w_np, sc, hi, wi, stride)
        cout = w_np.shape[0]
        convs.append({"Ms": ms, "Rs": rs, "shift": np.tile(sh, wo),
                      "K": wi * ci, "N": wo * cout, "Hi": hi, "Ho": ho})
        return ho, wo, cout

    def pool_layer(hi, wi, ci):
        m, r, ho, wo = _pool_matrices(hi, wi, ci)
        pools.append({"M": m, "R": r, "K": wi * ci, "N": wo * ci, "Hi": hi, "Ho": ho})
        return ho, wo, ci

    # --- network wiring (mirrors DownSample.forward) ---
    h1, w1, c1 = conv_layer(params["conv1"], hin, win, in_channels, 2)   # idx 0: conv1+norm1
    conv_layer(params["rb1"]["c1"], h1, w1, c1, 1)                       # idx 1
    conv_layer(params["rb1"]["c2"], h1, w1, c1, 1)                       # idx 2
    h2, w2, c2 = conv_layer(params["db"]["c1"], h1, w1, c1, 2)           # idx 3
    conv_layer(params["db"]["c3"], h1, w1, c1, 2)                        # idx 4 (plain conv)
    conv_layer(params["db"]["c2"], h2, w2, c2, 1)                        # idx 5
    conv_layer(params["rb2"]["c1"], h2, w2, c2, 1)                       # idx 6
    conv_layer(params["rb2"]["c2"], h2, w2, c2, 1)                       # idx 7
    h3, w3, c3 = pool_layer(h2, w2, c2)                                  # pool 0
    conv_layer(params["rb3"]["c1"], h3, w3, c3, 1)                       # idx 8
    conv_layer(params["rb3"]["c2"], h3, w3, c3, 1)                       # idx 9
    h4, w4, c4 = pool_layer(h3, w3, c3)                                  # pool 1

    # --- pack (zero-padded) so the kernel only has 4 inputs / 4 DMAs ---
    all_w = [m for cv in convs for m in cv["Ms"]] + [p["M"] for p in pools]
    all_r = [r for cv in convs for r in cv["Rs"]] + [p["R"] for p in pools]
    kmax = max(m.shape[0] for m in all_w)
    nmax = max(m.shape[1] for m in all_w)
    homax = max(r.shape[0] for r in all_r)
    himax = max(r.shape[1] for r in all_r)

    wpack = np.zeros((len(all_w), kmax, nmax), np.float32)
    rpack = np.zeros((len(all_r), homax, himax), np.float32)
    for i, m in enumerate(all_w):
        wpack[i, :m.shape[0], :m.shape[1]] = m
    for i, r in enumerate(all_r):
        rpack[i, :r.shape[0], :r.shape[1]] = r
    spack = np.zeros((len(convs), 1, nmax), np.float32)
    for i, cv in enumerate(convs):
        spack[i, 0, :cv["shift"].shape[0]] = cv["shift"]

    meta = {
        "convs": [{k: cv[k] for k in ("K", "N", "Hi", "Ho")} for cv in convs],
        "pools": [{k: p[k] for k in ("K", "N", "Hi", "Ho")} for p in pools],
        "pool_w0": 3 * len(convs),
        "out_shape": (h4, w4, c4),
    }
    return meta, jnp.asarray(wpack), jnp.asarray(rpack), jnp.asarray(spack)


# ----------------------------- fused Pallas kernel -----------------------------

def _downsample_kernel(meta, x_ref, w_ref, r_ref, s_ref, o_ref):
    convs, pools = meta["convs"], meta["pools"]
    pw0 = meta["pool_w0"]

    def conv(x, li, relu=True, residual=None):
        c = convs[li]
        k, n, hi, ho = c["K"], c["N"], c["Hi"], c["Ho"]
        acc = None
        for t in range(3):                       # 3 vertical taps, each = two small dots
            m = w_ref[3 * li + t, :k, :n]
            r = r_ref[3 * li + t, :ho, :hi]
            term = jnp.dot(r, jnp.dot(x, m, preferred_element_type=jnp.float32),
                           preferred_element_type=jnp.float32)
            acc = term if acc is None else acc + term
        acc = acc + s_ref[li, :, :n]             # folded-BN shift (zeros for the plain conv)
        if residual is not None:
            acc = acc + residual
        if relu:
            acc = jnp.maximum(acc, 0.0)
        return acc

    def pool(x, pi):
        p = pools[pi]
        k, n, hi, ho = p["K"], p["N"], p["Hi"], p["Ho"]
        m = w_ref[pw0 + pi, :k, :n]
        r = r_ref[pw0 + pi, :ho, :hi]
        return jnp.dot(r, jnp.dot(x, m, preferred_element_type=jnp.float32),
                       preferred_element_type=jnp.float32)

    x0 = x_ref[0]                        # (H, W*Cin) activation for this batch element
    a1 = conv(x0, 0)                     # conv1 + norm1 + relu            (stride 2)
    a2 = conv(a1, 1)                     # resblocks1: conv1
    a3 = conv(a2, 2, residual=a1)        # resblocks1: relu(conv2 + identity)
    b1 = conv(a3, 3)                     # downsample_block.conv1          (stride 2)
    idn = conv(a3, 4, relu=False)        # downsample_block.conv3 (plain conv, stride 2)
    a4 = conv(b1, 5, residual=idn)       # relu(downsample_block.conv2 + conv3(x))
    a5 = conv(a4, 6)                     # resblocks2: conv1
    a6 = conv(a5, 7, residual=a4)        # resblocks2: relu(conv2 + identity)
    p1 = pool(a6, 0)                     # pooling1
    a7 = conv(p1, 8)                     # resblocks3: conv1
    a8 = conv(a7, 9, residual=p1)        # resblocks3: relu(conv2 + identity)
    out = pool(a8, 1)                    # pooling2
    o_ref[0] = out.astype(o_ref.dtype)


def build_downsample_forward(meta):
    hf, wf, cf = meta["out_shape"]
    kernel = functools.partial(_downsample_kernel, meta)

    @jax.jit
    def forward(x_nchw, wpack, rpack, spack):
        b, cin, h, w = x_nchw.shape
        x = jnp.transpose(x_nchw, (0, 2, 3, 1)).astype(jnp.float32)
        x = x.reshape(b, h, w * cin)                      # (B, H, W*Cin), lane-dense last dim

        out = pl.pallas_call(
            kernel,
            grid=(b,),                                    # one batch element per step / core
            in_specs=[
                pl.BlockSpec((1, h, w * cin), lambda i: (i, 0, 0)),
                pl.BlockSpec(wpack.shape, lambda i: (0, 0, 0)),
                pl.BlockSpec(rpack.shape, lambda i: (0, 0, 0)),
                pl.BlockSpec(spack.shape, lambda i: (0, 0, 0)),
            ],
            out_specs=pl.BlockSpec((1, hf, wf * cf), lambda i: (i, 0, 0)),
            out_shape=jax.ShapeDtypeStruct((b, hf, wf * cf), jnp.float32),
            compiler_params=pltpu.CompilerParams(dimension_semantics=("parallel",)),
        )(x, wpack, rpack, spack)

        out = out.reshape(b, hf, wf, cf)
        return jnp.transpose(out, (0, 3, 1, 2))           # NHWC -> NCHW

    return forward


# ----------------------------- parameter construction -----------------------------

def _make_conv_w(key, cout, cin):
    return jax.random.normal(key, (cout, cin, 3, 3), jnp.float32) * 0.1


def _make_bn(key, c, eps=1e-5):
    k1, k2, k3, k4 = jax.random.split(key, 4)
    gamma = jax.random.uniform(k1, (c,), minval=0.5, maxval=1.5)
    beta = jax.random.normal(k2, (c,)) * 0.1
    mean = jax.random.normal(k3, (c,)) * 0.1
    var = jax.random.uniform(k4, (c,), minval=0.5, maxval=1.5)
    scale = gamma / jnp.sqrt(var + eps)
    shift = beta - mean * scale
    return scale.astype(jnp.float32), shift.astype(jnp.float32)


def make_params(key, in_channels, out_channels):
    c_half = out_channels // 2
    keys = jax.random.split(key, 32)
    ki = iter(range(32))

    def conv_bn(cout, cin):
        w = _make_conv_w(keys[next(ki)], cout, cin)
        s, b = _make_bn(keys[next(ki)], cout)
        return {"w": w, "scale": s, "shift": b}

    params = {
        "conv1": conv_bn(c_half, in_channels),
        "rb1": {"c1": conv_bn(c_half, c_half), "c2": conv_bn(c_half, c_half)},
        "db": {
            "c1": conv_bn(out_channels, c_half),
            "c2": conv_bn(out_channels, out_channels),
            "c3": {"w": _make_conv_w(keys[next(ki)], out_channels, c_half),
                   "scale": jnp.ones((out_channels,), jnp.float32),
                   "shift": jnp.zeros((out_channels,), jnp.float32)},
        },
        "rb2": {"c1": conv_bn(out_channels, out_channels),
                "c2": conv_bn(out_channels, out_channels)},
        "rb3": {"c1": conv_bn(out_channels, out_channels),
                "c2": conv_bn(out_channels, out_channels)},
    }
    return params


# ----------------------------- pure-JAX reference (verification) -----------------------------

def _ref_conv(x, w, stride):
    return lax.conv_general_dilated(
        x, w, (stride, stride), ((1, 1), (1, 1)),
        dimension_numbers=("NCHW", "OIHW", "NCHW"))


def _ref_cba(x, p, stride, relu, residual=None):
    y = _ref_conv(x, p["w"], stride)
    y = y * p["scale"][None, :, None, None] + p["shift"][None, :, None, None]
    if residual is not None:
        y = y + residual
    if relu:
        y = jnp.maximum(y, 0.0)
    return y


def _ref_resblock(x, p):
    y = _ref_cba(x, p["c1"], 1, True)
    return _ref_cba(y, p["c2"], 1, True, residual=x)


def _ref_pool(x):
    s = lax.reduce_window(x, 0.0, lax.add, (1, 1, 3, 3), (1, 1, 2, 2),
                          ((0, 0), (0, 0), (1, 1), (1, 1)))
    return s / 9.0


def downsample_reference(x, params):
    x = _ref_cba(x, params["conv1"], 2, True)
    x = _ref_resblock(x, params["rb1"])
    db = params["db"]
    y = _ref_cba(x, db["c1"], 2, True)
    idn = _ref_cba(x, db["c3"], 2, False)
    x = _ref_cba(y, db["c2"], 1, True, residual=idn)
    x = _ref_resblock(x, params["rb2"])
    x = _ref_pool(x)
    x = _ref_resblock(x, params["rb3"])
    x = _ref_pool(x)
    return x


# ----------------------------- main -----------------------------

if __name__ == "__main__":
    key = jax.random.PRNGKey(0)
    k_x, k_p = jax.random.split(key)

    B, C_in, H, W = 2, 4, 32, 32        # observation_shape = [4, 32, 32]
    out_channels = 8

    x = jax.random.normal(k_x, (B, C_in, H, W), jnp.float32)
    params = make_params(k_p, C_in, out_channels)

    meta, wpack, rpack, spack = prepare_plan(params, C_in, H, W)
    fwd = build_downsample_forward(meta)

    out = jax.block_until_ready(fwd(x, wpack, rpack, spack))
    ref = jax.block_until_ready(downsample_reference(x, params))

    assert out.shape == (B, out_channels, H // 16, W // 16), out.shape
    np.testing.assert_allclose(np.asarray(out), np.asarray(ref), rtol=1e-2, atol=1e-2)

    print("KERNEL_OK")
</pallas_src>

<mosaic_0001>
module attributes {stable_mosaic.version = 11 : i64} {
  func.func @_downsample_kernel(%arg0: i32, %arg1: memref<1x32x128xf32, #tpu.memory_space<vmem>>, %arg2: memref<32x128x64xf32, #tpu.memory_space<vmem>>, %arg3: memref<32x16x32xf32, #tpu.memory_space<vmem>>, %arg4: memref<10x1x64xf32, #tpu.memory_space<vmem>>, %arg5: memref<1x2x16xf32, #tpu.memory_space<vmem>>) attributes {dimension_semantics = [#tpu.dimension_semantics<parallel>], iteration_bounds = array<i64: 2>, scalar_prefetch = 0 : i64, scratch_operands = 0 : i64, tpu.core_type = #tpu.core_type<tc>, window_params = [{transform_indices = @transform_0, window_bounds = array<i64: 1, 32, 128>}, {pipeline_mode = #tpu.pipeline_mode<synchronous>, transform_indices = @transform_1, window_bounds = array<i64: 32, 128, 64>}, {pipeline_mode = #tpu.pipeline_mode<synchronous>, transform_indices = @transform_2, window_bounds = array<i64: 32, 16, 32>}, {pipeline_mode = #tpu.pipeline_mode<synchronous>, transform_indices = @transform_3, window_bounds = array<i64: 10, 1, 64>}, {transform_indices = @transform_4, window_bounds = array<i64: 1, 2, 16>}]} {
    %c0 = arith.constant 0 : index
    %c0_0 = arith.constant 0 : index
    %c0_1 = arith.constant 0 : index
    %0 = vector.load %arg1[%c0, %c0_0, %c0_1] : memref<1x32x128xf32, #tpu.memory_space<vmem>>, vector<1x32x128xf32>
    %1 = vector.shape_cast %0 : vector<1x32x128xf32> to vector<32x128xf32>
    %c0_2 = arith.constant 0 : index
    %c0_3 = arith.constant 0 : index
    %c0_4 = arith.constant 0 : index
    %2 = vector.load %arg2[%c0_2, %c0_3, %c0_4] : memref<32x128x64xf32, #tpu.memory_space<vmem>>, vector<1x128x64xf32>
    %3 = vector.shape_cast %2 : vector<1x128x64xf32> to vector<128x64xf32>
    %c0_5 = arith.constant 0 : index
    %c0_6 = arith.constant 0 : index
    %c0_7 = arith.constant 0 : index
    %4 = vector.load %arg3[%c0_5, %c0_6, %c0_7] : memref<32x16x32xf32, #tpu.memory_space<vmem>>, vector<1x16x32xf32>
    %5 = vector.shape_cast %4 : vector<1x16x32xf32> to vector<16x32xf32>
    %cst = arith.constant dense<0.000000e+00> : vector<32x64xf32>
    %6 = tpu.matmul %1, %3, %cst {dimension_numbers = #tpu.dot_dimension_numbers<[1], [0], [0], [1], [0, 0, 1, 1], [], []>} : vector<32x128xf32>, vector<128x64xf32>, vector<32x64xf32> -> vector<32x64xf32>
    %cst_8 = arith.constant dense<0.000000e+00> : vector<16x64xf32>
    %7 = tpu.matmul %5, %6, %cst_8 {dimension_numbers = #tpu.dot_dimension_numbers<[1], [0], [0], [1], [0, 0, 1, 1], [], []>} : vector<16x32xf32>, vector<32x64xf32>, vector<16x64xf32> -> vector<16x64xf32>
    %c1 = arith.constant 1 : index
    %c0_9 = arith.constant 0 : index
    %c0_10 = arith.constant 0 : index
    %8 = vector.load %arg2[%c1, %c0_9, %c0_10] : memref<32x128x64xf32, #tpu.memory_space<vmem>>, vector<1x128x64xf32>
    %9 = vector.shape_cast %8 : vector<1x128x64xf32> to vector<128x64xf32>
    %c1_11 = arith.constant 1 : index
    %c0_12 = arith.constant 0 : index
    %c0_13 = arith.constant 0 : index
    %10 = vector.load %arg3[%c1_11, %c0_12, %c0_13] : memref<32x16x32xf32, #tpu.memory_space<vmem>>, vector<1x16x32xf32>
    %11 = vector.shape_cast %10 : vector<1x16x32xf32> to vector<16x32xf32>
    %cst_14 = arith.constant dense<0.000000e+00> : vector<32x64xf32>
    %12 = tpu.matmul %1, %9, %cst_14 {dimension_numbers = #tpu.dot_dimension_numbers<[1], [0], [0], [1], [0, 0, 1, 1], [], []>} : vector<32x128xf32>, vector<128x64xf32>, vector<32x64xf32> -> vector<32x64xf32>
    %cst_15 = arith.constant dense<0.000000e+00> : vector<16x64xf32>
    %13 = tpu.matmul %11, %12, %cst_15 {dimension_numbers = #tpu.dot_dimension_numbers<[1], [0], [0], [1], [0, 0, 1, 1], [], []>} : vector<16x32xf32>, vector<32x64xf32>, vector<16x64xf32> -> vector<16x64xf32>
    %14 = arith.addf %7, %13 : vector<16x64xf32>
    %c2 = arith.constant 2 : index
    %c0_16 = arith.constant 0 : index
    %c0_17 = arith.constant 0 : index
    %15 = vector.load %arg2[%c2, %c0_16, %c0_17] : memref<32x128x64xf32, #tpu.memory_space<vmem>>, vector<1x128x64xf32>
    %16 = vector.shape_cast %15 : vector<1x128x64xf32> to vector<128x64xf32>
    %c2_18 = arith.constant 2 : index
    %c0_19 = arith.constant 0 : index
    %c0_20 = arith.constant 0 : index
    %17 = vector.load %arg3[%c2_18, %c0_19, %c0_20] : memref<32x16x32xf32, #tpu.memory_space<vmem>>, vector<1x16x32xf32>
    %18 = vector.shape_cast %17 : vector<1x16x32xf32> to vector<16x32xf32>
    %cst_21 = arith.constant dense<0.000000e+00> : vector<32x64xf32>
    %19 = tpu.matmul %1, %16, %cst_21 {dimension_numbers = #tpu.dot_dimension_numbers<[1], [0], [0], [1], [0, 0, 1, 1], [], []>} : vector<32x128xf32>, vector<128x64xf32>, vector<32x64xf32> -> vector<32x64xf32>
    %cst_22 = arith.constant dense<0.000000e+00> : vector<16x64xf32>
    %20 = tpu.matmul %18, %19, %cst_22 {dimension_numbers = #tpu.dot_dimension_numbers<[1], [0], [0], [1], [0, 0, 1, 1], [], []>} : vector<16x32xf32>, vector<32x64xf32>, vector<16x64xf32> -> vector<16x64xf32>
    %21 = arith.addf %14, %20 : vector<16x64xf32>
    %c0_23 = arith.constant 0 : index
    %c0_24 = arith.constant 0 : index
    %c0_25 = arith.constant 0 : index
    %22 = vector.load %arg4[%c0_23, %c0_24, %c0_25] : memref<10x1x64xf32, #tpu.memory_space<vmem>>, vector<1x1x64xf32>
    %23 = vector.shape_cast %22 : vector<1x1x64xf32> to vector<1x64xf32>
    %24 = vector.broadcast %23 : vector<1x64xf32> to vector<16x64xf32>
    %25 = arith.addf %21, %24 : vector<16x64xf32>
    %cst_26 = arith.constant 0.000000e+00 : f32
    %26 = vector.broadcast %cst_26 : f32 to vector<16x64xf32>
    %27 = arith.maximumf %25, %26 : vector<16x64xf32>
    %c3 = arith.constant 3 : index
    %c0_27 = arith.constant 0 : index
    %c0_28 = arith.constant 0 : index
    %28 = vector.load %arg2[%c3, %c0_27, %c0_28] : memref<32x128x64xf32, #tpu.memory_space<vmem>>, vector<1x64x64xf32>
    %29 = vector.shape_cast %28 : vector<1x64x64xf32> to vector<64x64xf32>
    %c3_29 = arith.constant 3 : index
    %c0_30 = arith.constant 0 : index
    %c0_31 = arith.constant 0 : index
    %30 = vector.load %arg3[%c3_29, %c0_30, %c0_31] : memref<32x16x32xf32, #tpu.memory_space<vmem>>, vector<1x16x16xf32>
    %31 = vector.shape_cast %30 : vector<1x16x16xf32> to vector<16x16xf32>
    %cst_32 = arith.constant dense<0.000000e+00> : vector<16x64xf32>
    %32 = tpu.matmul %27, %29, %cst_32 {dimension_numbers = #tpu.dot_dimension_numbers<[1], [0], [0], [1], [0, 0, 1, 1], [], []>} : vector<16x64xf32>, vector<64x64xf32>, vector<16x64xf32> -> vector<16x64xf32>
    %cst_33 = arith.constant dense<0.000000e+00> : vector<16x64xf32>
    %33 = tpu.matmul %31, %32, %cst_33 {dimension_numbers = #tpu.dot_dimension_numbers<[1], [0], [0], [1], [0, 0, 1, 1], [], []>} : vector<16x16xf32>, vector<16x64xf32>, vector<16x64xf32> -> vector<16x64xf32>
    %c4 = arith.constant 4 : index
    %c0_34 = arith.constant 0 : index
    %c0_35 = arith.constant 0 : index
    %34 = vector.load %arg2[%c4, %c0_34, %c0_35] : memref<32x128x64xf32, #tpu.memory_space<vmem>>, vector<1x64x64xf32>
    %35 = vector.shape_cast %34 : vector<1x64x64xf32> to vector<64x64xf32>
    %c4_36 = arith.constant 4 : index
    %c0_37 = arith.constant 0 : index
    %c0_38 = arith.constant 0 : index
    %36 = vector.load %arg3[%c4_36, %c0_37, %c0_38] : memref<32x16x32xf32, #tpu.memory_space<vmem>>, vector<1x16x16xf32>
    %37 = vector.shape_cast %36 : vector<1x16x16xf32> to vector<16x16xf32>
    %cst_39 = arith.constant dense<0.000000e+00> : vector<16x64xf32>
    %38 = tpu.matmul %27, %35, %cst_39 {dimension_numbers = #tpu.dot_dimension_numbers<[1], [0], [0], [1], [0, 0, 1, 1], [], []>} : vector<16x64xf32>, vector<64x64xf32>, vector<16x64xf32> -> vector<16x64xf32>
    %cst_40 = arith.constant dense<0.000000e+00> : vector<16x64xf32>
    %39 = tpu.matmul %37, %38, %cst_40 {dimension_numbers = #tpu.dot_dimension_numbers<[1], [0], [0], [1], [0, 0, 1, 1], [], []>} : vector<16x16xf32>, vector<16x64xf32>, vector<16x64xf32> -> vector<16x64xf32>
    %40 = arith.addf %33, %39 : vector<16x64xf32>
    %c5 = arith.constant 5 : index
    %c0_41 = arith.constant 0 : index
    %c0_42 = arith.constant 0 : index
    %41 = vector.load %arg2[%c5, %c0_41, %c0_42] : memref<32x128x64xf32, #tpu.memory_space<vmem>>, vector<1x64x64xf32>
    %42 = vector.shape_cast %41 : vector<1x64x64xf32> to vector<64x64xf32>
    %c5_43 = arith.constant 5 : index
    %c0_44 = arith.constant 0 : index
    %c0_45 = arith.constant 0 : index
    %43 = vector.load %arg3[%c5_43, %c0_44, %c0_45] : memref<32x16x32xf32, #tpu.memory_space<vmem>>, vector<1x16x16xf32>
    %44 = vector.shape_cast %43 : vector<1x16x16xf32> to vector<16x16xf32>
    %cst_46 = arith.constant dense<0.000000e+00> : vector<16x64xf32>
    %45 = tpu.matmul %27, %42, %cst_46 {dimension_numbers = #tpu.dot_dimension_numbers<[1], [0], [0], [1], [0, 0, 1, 1], [], []>} : vector<16x64xf32>, vector<64x64xf32>, vector<16x64xf32> -> vector<16x64xf32>
    %cst_47 = arith.constant dense<0.000000e+00> : vector<16x64xf32>
    %46 = tpu.matmul %44, %45, %cst_47 {dimension_numbers = #tpu.dot_dimension_numbers<[1], [0], [0], [1], [0, 0, 1, 1], [], []>} : vector<16x16xf32>, vector<16x64xf32>, vector<16x64xf32> -> vector<16x64xf32>
    %47 = arith.addf %40, %46 : vector<16x64xf32>
    %c1_48 = arith.constant 1 : index
    %c0_49 = arith.constant 0 : index
    %c0_50 = arith.constant 0 : index
    %48 = vector.load %arg4[%c1_48, %c0_49, %c0_50] : memref<10x1x64xf32, #tpu.memory_space<vmem>>, vector<1x1x64xf32>
    %49 = vector.shape_cast %48 : vector<1x1x64xf32> to vector<1x64xf32>
    %50 = vector.broadcast %49 : vector<1x64xf32> to vector<16x64xf32>
    %51 = arith.addf %47, %50 : vector<16x64xf32>
    %cst_51 = arith.constant 0.000000e+00 : f32
    %52 = vector.broadcast %cst_51 : f32 to vector<16x64xf32>
    %53 = arith.maximumf %51, %52 : vector<16x64xf32>
    %c6 = arith.constant 6 : index
    %c0_52 = arith.constant 0 : index
    %c0_53 = arith.constant 0 : index
    %54 = vector.load %arg2[%c6, %c0_52, %c0_53] : memref<32x128x64xf32, #tpu.memory_space<vmem>>, vector<1x64x64xf32>
    %55 = vector.shape_cast %54 : vector<1x64x64xf32> to vector<64x64xf32>
    %c6_54 = arith.constant 6 : index
    %c0_55 = arith.constant 0 : index
    %c0_56 = arith.constant 0 : index
    %56 = vector.load %arg3[%c6_54, %c0_55, %c0_56] : memref<32x16x32xf32, #tpu.memory_space<vmem>>, vector<1x16x16xf32>
    %57 = vector.shape_cast %56 : vector<1x16x16xf32> to vector<16x16xf32>
    %cst_57 = arith.constant dense<0.000000e+00> : vector<16x64xf32>
    %58 = tpu.matmul %53, %55, %cst_57 {dimension_numbers = #tpu.dot_dimension_numbers<[1], [0], [0], [1], [0, 0, 1, 1], [], []>} : vector<16x64xf32>, vector<64x64xf32>, vector<16x64xf32> -> vector<16x64xf32>
    %cst_58 = arith.constant dense<0.000000e+00> : vector<16x64xf32>
    %59 = tpu.matmul %57, %58, %cst_58 {dimension_numbers = #tpu.dot_dimension_numbers<[1], [0], [0], [1], [0, 0, 1, 1], [], []>} : vector<16x16xf32>, vector<16x64xf32>, vector<16x64xf32> -> vector<16x64xf32>
    %c7 = arith.constant 7 : index
    %c0_59 = arith.constant 0 : index
    %c0_60 = arith.constant 0 : index
    %60 = vector.load %arg2[%c7, %c0_59, %c0_60] : memref<32x128x64xf32, #tpu.memory_space<vmem>>, vector<1x64x64xf32>
    %61 = vector.shape_cast %60 : vector<1x64x64xf32> to vector<64x64xf32>
    %c7_61 = arith.constant 7 : index
    %c0_62 = arith.constant 0 : index
    %c0_63 = arith.constant 0 : index
    %62 = vector.load %arg3[%c7_61, %c0_62, %c0_63] : memref<32x16x32xf32, #tpu.memory_space<vmem>>, vector<1x16x16xf32>
    %63 = vector.shape_cast %62 : vector<1x16x16xf32> to vector<16x16xf32>
    %cst_64 = arith.constant dense<0.000000e+00> : vector<16x64xf32>
    %64 = tpu.matmul %53, %61, %cst_64 {dimension_numbers = #tpu.dot_dimension_numbers<[1], [0], [0], [1], [0, 0, 1, 1], [], []>} : vector<16x64xf32>, vector<64x64xf32>, vector<16x64xf32> -> vector<16x64xf32>
    %cst_65 = arith.constant dense<0.000000e+00> : vector<16x64xf32>
    %65 = tpu.matmul %63, %64, %cst_65 {dimension_numbers = #tpu.dot_dimension_numbers<[1], [0], [0], [1], [0, 0, 1, 1], [], []>} : vector<16x16xf32>, vector<16x64xf32>, vector<16x64xf32> -> vector<16x64xf32>
    %66 = arith.addf %59, %65 : vector<16x64xf32>
    %c8 = arith.constant 8 : index
    %c0_66 = arith.constant 0 : index
    %c0_67 = arith.constant 0 : index
    %67 = vector.load %arg2[%c8, %c0_66, %c0_67] : memref<32x128x64xf32, #tpu.memory_space<vmem>>, vector<1x64x64xf32>
    %68 = vector.shape_cast %67 : vector<1x64x64xf32> to vector<64x64xf32>
    %c8_68 = arith.constant 8 : index
    %c0_69 = arith.constant 0 : index
    %c0_70 = arith.constant 0 : index
    %69 = vector.load %arg3[%c8_68, %c0_69, %c0_70] : memref<32x16x32xf32, #tpu.memory_space<vmem>>, vector<1x16x16xf32>
    %70 = vector.shape_cast %69 : vector<1x16x16xf32> to vector<16x16xf32>
    %cst_71 = arith.constant dense<0.000000e+00> : vector<16x64xf32>
    %71 = tpu.matmul %53, %68, %cst_71 {dimension_numbers = #tpu.dot_dimension_numbers<[1], [0], [0], [1], [0, 0, 1, 1], [], []>} : vector<16x64xf32>, vector<64x64xf32>, vector<16x64xf32> -> vector<16x64xf32>
    %cst_72 = arith.constant dense<0.000000e+00> : vector<16x64xf32>
    %72 = tpu.matmul %70, %71, %cst_72 {dimension_numbers = #tpu.dot_dimension_numbers<[1], [0], [0], [1], [0, 0, 1, 1], [], []>} : vector<16x16xf32>, vector<16x64xf32>, vector<16x64xf32> -> vector<16x64xf32>
    %73 = arith.addf %66, %72 : vector<16x64xf32>
    %c2_73 = arith.constant 2 : index
    %c0_74 = arith.constant 0 : index
    %c0_75 = arith.constant 0 : index
    %74 = vector.load %arg4[%c2_73, %c0_74, %c0_75] : memref<10x1x64xf32, #tpu.memory_space<vmem>>, vector<1x1x64xf32>
    %75 = vector.shape_cast %74 : vector<1x1x64xf32> to vector<1x64xf32>
    %76 = vector.broadcast %75 : vector<1x64xf32> to vector<16x64xf32>
    %77 = arith.addf %73, %76 : vector<16x64xf32>
    %78 = arith.addf %77, %27 : vector<16x64xf32>
    %cst_76 = arith.constant 0.000000e+00 : f32
    %79 = vector.broadcast %cst_76 : f32 to vector<16x64xf32>
    %80 = arith.maximumf %78, %79 : vector<16x64xf32>
    %c9 = arith.constant 9 : index
    %c0_77 = arith.constant 0 : index
    %c0_78 = arith.constant 0 : index
    %81 = vector.load %arg2[%c9, %c0_77, %c0_78] : memref<32x128x64xf32, #tpu.memory_space<vmem>>, vector<1x64x64xf32>
    %82 = vector.shape_cast %81 : vector<1x64x64xf32> to vector<64x64xf32>
    %c9_79 = arith.constant 9 : index
    %c0_80 = arith.constant 0 : index
    %c0_81 = arith.constant 0 : index
    %83 = vector.load %arg3[%c9_79, %c0_80, %c0_81] : memref<32x16x32xf32, #tpu.memory_space<vmem>>, vector<1x8x16xf32>
    %84 = vector.shape_cast %83 : vector<1x8x16xf32> to vector<8x16xf32>
    %cst_82 = arith.constant dense<0.000000e+00> : vector<16x64xf32>
    %85 = tpu.matmul %80, %82, %cst_82 {dimension_numbers = #tpu.dot_dimension_numbers<[1], [0], [0], [1], [0, 0, 1, 1], [], []>} : vector<16x64xf32>, vector<64x64xf32>, vector<16x64xf32> -> vector<16x64xf32>
    %cst_83 = arith.constant dense<0.000000e+00> : vector<8x64xf32>
    %86 = tpu.matmul %84, %85, %cst_83 {dimension_numbers = #tpu.dot_dimension_numbers<[1], [0], [0], [1], [0, 0, 1, 1], [], []>} : vector<8x16xf32>, vector<16x64xf32>, vector<8x64xf32> -> vector<8x64xf32>
    %c10 = arith.constant 10 : index
    %c0_84 = arith.constant 0 : index
    %c0_85 = arith.constant 0 : index
    %87 = vector.load %arg2[%c10, %c0_84, %c0_85] : memref<32x128x64xf32, #tpu.memory_space<vmem>>, vector<1x64x64xf32>
    %88 = vector.shape_cast %87 : vector<1x64x64xf32> to vector<64x64xf32>
    %c10_86 = arith.constant 10 : index
    %c0_87 = arith.constant 0 : index
    %c0_88 = arith.constant 0 : index
    %89 = vector.load %arg3[%c10_86, %c0_87, %c0_88] : memref<32x16x32xf32, #tpu.memory_space<vmem>>, vector<1x8x16xf32>
    %90 = vector.shape_cast %89 : vector<1x8x16xf32> to vector<8x16xf32>
    %cst_89 = arith.constant dense<0.000000e+00> : vector<16x64xf32>
    %91 = tpu.matmul %80, %88, %cst_89 {dimension_numbers = #tpu.dot_dimension_numbers<[1], [0], [0], [1], [0, 0, 1, 1], [], []>} : vector<16x64xf32>, vector<64x64xf32>, vector<16x64xf32> -> vector<16x64xf32>
    %cst_90 = arith.constant dense<0.000000e+00> : vector<8x64xf32>
    %92 = tpu.matmul %90, %91, %cst_90 {dimension_numbers = #tpu.dot_dimension_numbers<[1], [0], [0], [1], [0, 0, 1, 1], [], []>} : vector<8x16xf32>, vector<16x64xf32>, vector<8x64xf32> -> vector<8x64xf32>
    %93 = arith.addf %86, %92 : vector<8x64xf32>
    %c11 = arith.constant 11 : index
    %c0_91 = arith.constant 0 : index
    %c0_92 = arith.constant 0 : index
    %94 = vector.load %arg2[%c11, %c0_91, %c0_92] : memref<32x128x64xf32, #tpu.memory_space<vmem>>, vector<1x64x64xf32>
    %95 = vector.shape_cast %94 : vector<1x64x64xf32> to vector<64x64xf32>
    %c11_93 = arith.constant 11 : index
    %c0_94 = arith.constant 0 : index
    %c0_95 = arith.constant 0 : index
    %96 = vector.load %arg3[%c11_93, %c0_94, %c0_95] : memref<32x16x32xf32, #tpu.memory_space<vmem>>, vector<1x8x16xf32>
    %97 = vector.shape_cast %96 : vector<1x8x16xf32> to vector<8x16xf32>
    %cst_96 = arith.constant dense<0.000000e+00> : vector<16x64xf32>
    %98 = tpu.matmul %80, %95, %cst_96 {dimension_numbers = #tpu.dot_dimension_numbers<[1], [0], [0], [1], [0, 0, 1, 1], [], []>} : vector<16x64xf32>, vector<64x64xf32>, vector<16x64xf32> -> vector<16x64xf32>
    %cst_97 = arith.constant dense<0.000000e+00> : vector<8x64xf32>
    %99 = tpu.matmul %97, %98, %cst_97 {dimension_numbers = #tpu.dot_dimension_numbers<[1], [0], [0], [1], [0, 0, 1, 1], [], []>} : vector<8x16xf32>, vector<16x64xf32>, vector<8x64xf32> -> vector<8x64xf32>
    %100 = arith.addf %93, %99 : vector<8x64xf32>
    %c3_98 = arith.constant 3 : index
    %c0_99 = arith.constant 0 : index
    %c0_100 = arith.constant 0 : index
    %101 = vector.load %arg4[%c3_98, %c0_99, %c0_100] : memref<10x1x64xf32, #tpu.memory_space<vmem>>, vector<1x1x64xf32>
    %102 = vector.shape_cast %101 : vector<1x1x64xf32> to vector<1x64xf32>
    %103 = vector.broadcast %102 : vector<1x64xf32> to vector<8x64xf32>
    %104 = arith.addf %100, %103 : vector<8x64xf32>
    %cst_101 = arith.constant 0.000000e+00 : f32
    %105 = vector.broadcast %cst_101 : f32 to vector<8x64xf32>
    %106 = arith.maximumf %104, %105 : vector<8x64xf32>
    %c12 = arith.constant 12 : index
    %c0_102 = arith.constant 0 : index
    %c0_103 = arith.constant 0 : index
    %107 = vector.load %arg2[%c12, %c0_102, %c0_103] : memref<32x128x64xf32, #tpu.memory_space<vmem>>, vector<1x64x64xf32>
    %108 = vector.shape_cast %107 : vector<1x64x64xf32> to vector<64x64xf32>
    %c12_104 = arith.constant 12 : index
    %c0_105 = arith.constant 0 : index
    %c0_106 = arith.constant 0 : index
    %109 = vector.load %arg3[%c12_104, %c0_105, %c0_106] : memref<32x16x32xf32, #tpu.memory_space<vmem>>, vector<1x8x16xf32>
    %110 = vector.shape_cast %109 : vector<1x8x16xf32> to vector<8x16xf32>
    %cst_107 = arith.constant dense<0.000000e+00> : vector<16x64xf32>
    %111 = tpu.matmul %80, %108, %cst_107 {dimension_numbers = #tpu.dot_dimension_numbers<[1], [0], [0], [1], [0, 0, 1, 1], [], []>} : vector<16x64xf32>, vector<64x64xf32>, vector<16x64xf32> -> vector<16x64xf32>
    %cst_108 = arith.constant dense<0.000000e+00> : vector<8x64xf32>
    %112 = tpu.matmul %110, %111, %cst_108 {dimension_numbers = #tpu.dot_dimension_numbers<[1], [0], [0], [1], [0, 0, 1, 1], [], []>} : vector<8x16xf32>, vector<16x64xf32>, vector<8x64xf32> -> vector<8x64xf32>
    %c13 = arith.constant 13 : index
    %c0_109 = arith.constant 0 : index
    %c0_110 = arith.constant 0 : index
    %113 = vector.load %arg2[%c13, %c0_109, %c0_110] : memref<32x128x64xf32, #tpu.memory_space<vmem>>, vector<1x64x64xf32>
    %114 = vector.shape_cast %113 : vector<1x64x64xf32> to vector<64x64xf32>
    %c13_111 = arith.constant 13 : index
    %c0_112 = arith.constant 0 : index
    %c0_113 = arith.constant 0 : index
    %115 = vector.load %arg3[%c13_111, %c0_112, %c0_113] : memref<32x16x32xf32, #tpu.memory_space<vmem>>, vector<1x8x16xf32>
    %116 = vector.shape_cast %115 : vector<1x8x16xf32> to vector<8x16xf32>
    %cst_114 = arith.constant dense<0.000000e+00> : vector<16x64xf32>
    %117 = tpu.matmul %80, %114, %cst_114 {dimension_numbers = #tpu.dot_dimension_numbers<[1], [0], [0], [1], [0, 0, 1, 1], [], []>} : vector<16x64xf32>, vector<64x64xf32>, vector<16x64xf32> -> vector<16x64xf32>
    %cst_115 = arith.constant dense<0.000000e+00> : vector<8x64xf32>
    %118 = tpu.matmul %116, %117, %cst_115 {dimension_numbers = #tpu.dot_dimension_numbers<[1], [0], [0], [1], [0, 0, 1, 1], [], []>} : vector<8x16xf32>, vector<16x64xf32>, vector<8x64xf32> -> vector<8x64xf32>
    %119 = arith.addf %112, %118 : vector<8x64xf32>
    %c14 = arith.constant 14 : index
    %c0_116 = arith.constant 0 : index
    %c0_117 = arith.constant 0 : index
    %120 = vector.load %arg2[%c14, %c0_116, %c0_117] : memref<32x128x64xf32, #tpu.memory_space<vmem>>, vector<1x64x64xf32>
    %121 = vector.shape_cast %120 : vector<1x64x64xf32> to vector<64x64xf32>
    %c14_118 = arith.constant 14 : index
    %c0_119 = arith.constant 0 : index
    %c0_120 = arith.constant 0 : index
    %122 = vector.load %arg3[%c14_118, %c0_119, %c0_120] : memref<32x16x32xf32, #tpu.memory_space<vmem>>, vector<1x8x16xf32>
    %123 = vector.shape_cast %122 : vector<1x8x16xf32> to vector<8x16xf32>
    %cst_121 = arith.constant dense<0.000000e+00> : vector<16x64xf32>
    %124 = tpu.matmul %80, %121, %cst_121 {dimension_numbers = #tpu.dot_dimension_numbers<[1], [0], [0], [1], [0, 0, 1, 1], [], []>} : vector<16x64xf32>, vector<64x64xf32>, vector<16x64xf32> -> vector<16x64xf32>
    %cst_122 = arith.constant dense<0.000000e+00> : vector<8x64xf32>
    %125 = tpu.matmul %123, %124, %cst_122 {dimension_numbers = #tpu.dot_dimension_numbers<[1], [0], [0], [1], [0, 0, 1, 1], [], []>} : vector<8x16xf32>, vector<16x64xf32>, vector<8x64xf32> -> vector<8x64xf32>
    %126 = arith.addf %119, %125 : vector<8x64xf32>
    %c4_123 = arith.constant 4 : index
    %c0_124 = arith.constant 0 : index
    %c0_125 = arith.constant 0 : index
    %127 = vector.load %arg4[%c4_123, %c0_124, %c0_125] : memref<10x1x64xf32, #tpu.memory_space<vmem>>, vector<1x1x64xf32>
    %128 = vector.shape_cast %127 : vector<1x1x64xf32> to vector<1x64xf32>
    %129 = vector.broadcast %128 : vector<1x64xf32> to vector<8x64xf32>
    %130 = arith.addf %126, %129 : vector<8x64xf32>
    %c15 = arith.constant 15 : index
    %c0_126 = arith.constant 0 : index
    %c0_127 = arith.constant 0 : index
    %131 = vector.load %arg2[%c15, %c0_126, %c0_127] : memref<32x128x64xf32, #tpu.memory_space<vmem>>, vector<1x64x64xf32>
    %132 = vector.shape_cast %131 : vector<1x64x64xf32> to vector<64x64xf32>
    %c15_128 = arith.constant 15 : index
    %c0_129 = arith.constant 0 : index
    %c0_130 = arith.constant 0 : index
    %133 = vector.load %arg3[%c15_128, %c0_129, %c0_130] : memref<32x16x32xf32, #tpu.memory_space<vmem>>, vector<1x8x8xf32>
    %134 = vector.shape_cast %133 : vector<1x8x8xf32> to vector<8x8xf32>
    %cst_131 = arith.constant dense<0.000000e+00> : vector<8x64xf32>
    %135 = tpu.matmul %106, %132, %cst_131 {dimension_numbers = #tpu.dot_dimension_numbers<[1], [0], [0], [1], [0, 0, 1, 1], [], []>} : vector<8x64xf32>, vector<64x64xf32>, vector<8x64xf32> -> vector<8x64xf32>
    %cst_132 = arith.constant dense<0.000000e+00> : vector<8x64xf32>
    %136 = tpu.matmul %134, %135, %cst_132 {dimension_numbers = #tpu.dot_dimension_numbers<[1], [0], [0], [1], [0, 0, 1, 1], [], []>} : vector<8x8xf32>, vector<8x64xf32>, vector<8x64xf32> -> vector<8x64xf32>
    %c16 = arith.constant 16 : index
    %c0_133 = arith.constant 0 : index
    %c0_134 = arith.constant 0 : index
    %137 = vector.load %arg2[%c16, %c0_133, %c0_134] : memref<32x128x64xf32, #tpu.memory_space<vmem>>, vector<1x64x64xf32>
    %138 = vector.shape_cast %137 : vector<1x64x64xf32> to vector<64x64xf32>
    %c16_135 = arith.constant 16 : index
    %c0_136 = arith.constant 0 : index
    %c0_137 = arith.constant 0 : index
    %139 = vector.load %arg3[%c16_135, %c0_136, %c0_137] : memref<32x16x32xf32, #tpu.memory_space<vmem>>, vector<1x8x8xf32>
    %140 = vector.shape_cast %139 : vector<1x8x8xf32> to vector<8x8xf32>
    %cst_138 = arith.constant dense<0.000000e+00> : vector<8x64xf32>
    %141 = tpu.matmul %106, %138, %cst_138 {dimension_numbers = #tpu.dot_dimension_numbers<[1], [0], [0], [1], [0, 0, 1, 1], [], []>} : vector<8x64xf32>, vector<64x64xf32>, vector<8x64xf32> -> vector<8x64xf32>
    %cst_139 = arith.constant dense<0.000000e+00> : vector<8x64xf32>
    %142 = tpu.matmul %140, %141, %cst_139 {dimension_numbers = #tpu.dot_dimension_numbers<[1], [0], [0], [1], [0, 0, 1, 1], [], []>} : vector<8x8xf32>, vector<8x64xf32>, vector<8x64xf32> -> vector<8x64xf32>
    %143 = arith.addf %136, %142 : vector<8x64xf32>
    %c17 = arith.constant 17 : index
    %c0_140 = arith.constant 0 : index
    %c0_141 = arith.constant 0 : index
    %144 = vector.load %arg2[%c17, %c0_140, %c0_141] : memref<32x128x64xf32, #tpu.memory_space<vmem>>, vector<1x64x64xf32>
    %145 = vector.shape_cast %144 : vector<1x64x64xf32> to vector<64x64xf32>
    %c17_142 = arith.constant 17 : index
    %c0_143 = arith.constant 0 : index
    %c0_144 = arith.constant 0 : index
    %146 = vector.load %arg3[%c17_142, %c0_143, %c0_144] : memref<32x16x32xf32, #tpu.memory_space<vmem>>, vector<1x8x8xf32>
    %147 = vector.shape_cast %146 : vector<1x8x8xf32> to vector<8x8xf32>
    %cst_145 = arith.constant dense<0.000000e+00> : vector<8x64xf32>
    %148 = tpu.matmul %106, %145, %cst_145 {dimension_numbers = #tpu.dot_dimension_numbers<[1], [0], [0], [1], [0, 0, 1, 1], [], []>} : vector<8x64xf32>, vector<64x64xf32>, vector<8x64xf32> -> vector<8x64xf32>
    %cst_146 = arith.constant dense<0.000000e+00> : vector<8x64xf32>
    %149 = tpu.matmul %147, %148, %cst_146 {dimension_numbers = #tpu.dot_dimension_numbers<[1], [0], [0], [1], [0, 0, 1, 1], [], []>} : vector<8x8xf32>, vector<8x64xf32>, vector<8x64xf32> -> vector<8x64xf32>
    %150 = arith.addf %143, %149 : vector<8x64xf32>
    %c5_147 = arith.constant 5 : index
    %c0_148 = arith.constant 0 : index
    %c0_149 = arith.constant 0 : index
    %151 = vector.load %arg4[%c5_147, %c0_148, %c0_149] : memref<10x1x64xf32, #tpu.memory_space<vmem>>, vector<1x1x64xf32>
    %152 = vector.shape_cast %151 : vector<1x1x64xf32> to vector<1x64xf32>
    %153 = vector.broadcast %152 : vector<1x64xf32> to vector<8x64xf32>
    %154 = arith.addf %150, %153 : vector<8x64xf32>
    %155 = arith.addf %154, %130 : vector<8x64xf32>
    %cst_150 = arith.constant 0.000000e+00 : f32
    %156 = vector.broadcast %cst_150 : f32 to vector<8x64xf32>
    %157 = arith.maximumf %155, %156 : vector<8x64xf32>
    %c18 = arith.constant 18 : index
    %c0_151 = arith.constant 0 : index
    %c0_152 = arith.constant 0 : index
    %158 = vector.load %arg2[%c18, %c0_151, %c0_152] : memref<32x128x64xf32, #tpu.memory_space<vmem>>, vector<1x64x64xf32>
    %159 = vector.shape_cast %158 : vector<1x64x64xf32> to vector<64x64xf32>
    %c18_153 = arith.constant 18 : index
    %c0_154 = arith.constant 0 : index
    %c0_155 = arith.constant 0 : index
    %160 = vector.load %arg3[%c18_153, %c0_154, %c0_155] : memref<32x16x32xf32, #tpu.memory_space<vmem>>, vector<1x8x8xf32>
    %161 = vector.shape_cast %160 : vector<1x8x8xf32> to vector<8x8xf32>
    %cst_156 = arith.constant dense<0.000000e+00> : vector<8x64xf32>
    %162 = tpu.matmul %157, %159, %cst_156 {dimension_numbers = #tpu.dot_dimension_numbers<[1], [0], [0], [1], [0, 0, 1, 1], [], []>} : vector<8x64xf32>, vector<64x64xf32>, vector<8x64xf32> -> vector<8x64xf32>
    %cst_157 = arith.constant dense<0.000000e+00> : vector<8x64xf32>
    %163 = tpu.matmul %161, %162, %cst_157 {dimension_numbers = #tpu.dot_dimension_numbers<[1], [0], [0], [1], [0, 0, 1, 1], [], []>} : vector<8x8xf32>, vector<8x64xf32>, vector<8x64xf32> -> vector<8x64xf32>
    %c19 = arith.constant 19 : index
    %c0_158 = arith.constant 0 : index
    %c0_159 = arith.constant 0 : index
    %164 = vector.load %arg2[%c19, %c0_158, %c0_159] : memref<32x128x64xf32, #tpu.memory_space<vmem>>, vector<1x64x64xf32>
    %165 = vector.shape_cast %164 : vector<1x64x64xf32> to vector<64x64xf32>
    %c19_160 = arith.constant 19 : index
    %c0_161 = arith.constant 0 : index
    %c0_162 = arith.constant 0 : index
    %166 = vector.load %arg3[%c19_160, %c0_161, %c0_162] : memref<32x16x32xf32, #tpu.memory_space<vmem>>, vector<1x8x8xf32>
    %167 = vector.shape_cast %166 : vector<1x8x8xf32> to vector<8x8xf32>
    %cst_163 = arith.constant dense<0.000000e+00> : vector<8x64xf32>
    %168 = tpu.matmul %157, %165, %cst_163 {dimension_numbers = #tpu.dot_dimension_numbers<[1], [0], [0], [1], [0, 0, 1, 1], [], []>} : vector<8x64xf32>, vector<64x64xf32>, vector<8x64xf32> -> vector<8x64xf32>
    %cst_164 = arith.constant dense<0.000000e+00> : vector<8x64xf32>
    %169 = tpu.matmul %167, %168, %cst_164 {dimension_numbers = #tpu.dot_dimension_numbers<[1], [0], [0], [1], [0, 0, 1, 1], [], []>} : vector<8x8xf32>, vector<8x64xf32>, vector<8x64xf32> -> vector<8x64xf32>
    %170 = arith.addf %163, %169 : vector<8x64xf32>
    %c20 = arith.constant 20 : index
    %c0_165 = arith.constant 0 : index
    %c0_166 = arith.constant 0 : index
    %171 = vector.load %arg2[%c20, %c0_165, %c0_166] : memref<32x128x64xf32, #tpu.memory_space<vmem>>, vector<1x64x64xf32>
    %172 = vector.shape_cast %171 : vector<1x64x64xf32> to vector<64x64xf32>
    %c20_167 = arith.constant 20 : index
    %c0_168 = arith.constant 0 : index
    %c0_169 = arith.constant 0 : index
    %173 = vector.load %arg3[%c20_167, %c0_168, %c0_169] : memref<32x16x32xf32, #tpu.memory_space<vmem>>, vector<1x8x8xf32>
    %174 = vector.shape_cast %173 : vector<1x8x8xf32> to vector<8x8xf32>
    %cst_170 = arith.constant dense<0.000000e+00> : vector<8x64xf32>
    %175 = tpu.matmul %157, %172, %cst_170 {dimension_numbers = #tpu.dot_dimension_numbers<[1], [0], [0], [1], [0, 0, 1, 1], [], []>} : vector<8x64xf32>, vector<64x64xf32>, vector<8x64xf32> -> vector<8x64xf32>
    %cst_171 = arith.constant dense<0.000000e+00> : vector<8x64xf32>
    %176 = tpu.matmul %174, %175, %cst_171 {dimension_numbers = #tpu.dot_dimension_numbers<[1], [0], [0], [1], [0, 0, 1, 1], [], []>} : vector<8x8xf32>, vector<8x64xf32>, vector<8x64xf32> -> vector<8x64xf32>
    %177 = arith.addf %170, %176 : vector<8x64xf32>
    %c6_172 = arith.constant 6 : index
    %c0_173 = arith.constant 0 : index
    %c0_174 = arith.constant 0 : index
    %178 = vector.load %arg4[%c6_172, %c0_173, %c0_174] : memref<10x1x64xf32, #tpu.memory_space<vmem>>, vector<1x1x64xf32>
    %179 = vector.shape_cast %178 : vector<1x1x64xf32> to vector<1x64xf32>
    %180 = vector.broadcast %179 : vector<1x64xf32> to vector<8x64xf32>
    %181 = arith.addf %177, %180 : vector<8x64xf32>
    %cst_175 = arith.constant 0.000000e+00 : f32
    %182 = vector.broadcast %cst_175 : f32 to vector<8x64xf32>
    %183 = arith.maximumf %181, %182 : vector<8x64xf32>
    %c21 = arith.constant 21 : index
    %c0_176 = arith.constant 0 : index
    %c0_177 = arith.constant 0 : index
    %184 = vector.load %arg2[%c21, %c0_176, %c0_177] : memref<32x128x64xf32, #tpu.memory_space<vmem>>, vector<1x64x64xf32>
    %185 = vector.shape_cast %184 : vector<1x64x64xf32> to vector<64x64xf32>
    %c21_178 = arith.constant 21 : index
    %c0_179 = arith.constant 0 : index
    %c0_180 = arith.constant 0 : index
    %186 = vector.load %arg3[%c21_178, %c0_179, %c0_180] : memref<32x16x32xf32, #tpu.memory_space<vmem>>, vector<1x8x8xf32>
    %187 = vector.shape_cast %186 : vector<1x8x8xf32> to vector<8x8xf32>
    %cst_181 = arith.constant dense<0.000000e+00> : vector<8x64xf32>
    %188 = tpu.matmul %183, %185, %cst_181 {dimension_numbers = #tpu.dot_dimension_numbers<[1], [0], [0], [1], [0, 0, 1, 1], [], []>} : vector<8x64xf32>, vector<64x64xf32>, vector<8x64xf32> -> vector<8x64xf32>
    %cst_182 = arith.constant dense<0.000000e+00> : vector<8x64xf32>
    %189 = tpu.matmul %187, %188, %cst_182 {dimension_numbers = #tpu.dot_dimension_numbers<[1], [0], [0], [1], [0, 0, 1, 1], [], []>} : vector<8x8xf32>, vector<8x64xf32>, vector<8x64xf32> -> vector<8x64xf32>
    %c22 = arith.constant 22 : index
    %c0_183 = arith.constant 0 : index
    %c0_184 = arith.constant 0 : index
    %190 = vector.load %arg2[%c22, %c0_183, %c0_184] : memref<32x128x64xf32, #tpu.memory_space<vmem>>, vector<1x64x64xf32>
    %191 = vector.shape_cast %190 : vector<1x64x64xf32> to vector<64x64xf32>
    %c22_185 = arith.constant 22 : index
    %c0_186 = arith.constant 0 : index
    %c0_187 = arith.constant 0 : index
    %192 = vector.load %arg3[%c22_185, %c0_186, %c0_187] : memref<32x16x32xf32, #tpu.memory_space<vmem>>, vector<1x8x8xf32>
    %193 = vector.shape_cast %192 : vector<1x8x8xf32> to vector<8x8xf32>
    %cst_188 = arith.constant dense<0.000000e+00> : vector<8x64xf32>
    %194 = tpu.matmul %183, %191, %cst_188 {dimension_numbers = #tpu.dot_dimension_numbers<[1], [0], [0], [1], [0, 0, 1, 1], [], []>} : vector<8x64xf32>, vector<64x64xf32>, vector<8x64xf32> -> vector<8x64xf32>
    %cst_189 = arith.constant dense<0.000000e+00> : vector<8x64xf32>
    %195 = tpu.matmul %193, %194, %cst_189 {dimension_numbers = #tpu.dot_dimension_numbers<[1], [0], [0], [1], [0, 0, 1, 1], [], []>} : vector<8x8xf32>, vector<8x64xf32>, vector<8x64xf32> -> vector<8x64xf32>
    %196 = arith.addf %189, %195 : vector<8x64xf32>
    %c23 = arith.constant 23 : index
    %c0_190 = arith.constant 0 : index
    %c0_191 = arith.constant 0 : index
    %197 = vector.load %arg2[%c23, %c0_190, %c0_191] : memref<32x128x64xf32, #tpu.memory_space<vmem>>, vector<1x64x64xf32>
    %198 = vector.shape_cast %197 : vector<1x64x64xf32> to vector<64x64xf32>
    %c23_192 = arith.constant 23 : index
    %c0_193 = arith.constant 0 : index
    %c0_194 = arith.constant 0 : index
    %199 = vector.load %arg3[%c23_192, %c0_193, %c0_194] : memref<32x16x32xf32, #tpu.memory_space<vmem>>, vector<1x8x8xf32>
    %200 = vector.shape_cast %199 : vector<1x8x8xf32> to vector<8x8xf32>
    %cst_195 = arith.constant dense<0.000000e+00> : vector<8x64xf32>
    %201 = tpu.matmul %183, %198, %cst_195 {dimension_numbers = #tpu.dot_dimension_numbers<[1], [0], [0], [1], [0, 0, 1, 1], [], []>} : vector<8x64xf32>, vector<64x64xf32>, vector<8x64xf32> -> vector<8x64xf32>
    %cst_196 = arith.constant dense<0.000000e+00> : vector<8x64xf32>
    %202 = tpu.matmul %200, %201, %cst_196 {dimension_numbers = #tpu.dot_dimension_numbers<[1], [0], [0], [1], [0, 0, 1, 1], [], []>} : vector<8x8xf32>, vector<8x64xf32>, vector<8x64xf32> -> vector<8x64xf32>
    %203 = arith.addf %196, %202 : vector<8x64xf32>
    %c7_197 = arith.constant 7 : index
    %c0_198 = arith.constant 0 : index
    %c0_199 = arith.constant 0 : index
    %204 = vector.load %arg4[%c7_197, %c0_198, %c0_199] : memref<10x1x64xf32, #tpu.memory_space<vmem>>, vector<1x1x64xf32>
    %205 = vector.shape_cast %204 : vector<1x1x64xf32> to vector<1x64xf32>
    %206 = vector.broadcast %205 : vector<1x64xf32> to vector<8x64xf32>
    %207 = arith.addf %203, %206 : vector<8x64xf32>
    %208 = arith.addf %207, %157 : vector<8x64xf32>
    %cst_200 = arith.constant 0.000000e+00 : f32
    %209 = vector.broadcast %cst_200 : f32 to vector<8x64xf32>
    %210 = arith.maximumf %208, %209 : vector<8x64xf32>
    %c30 = arith.constant 30 : index
    %c0_201 = arith.constant 0 : index
    %c0_202 = arith.constant 0 : index
    %211 = vector.load %arg2[%c30, %c0_201, %c0_202] : memref<32x128x64xf32, #tpu.memory_space<vmem>>, vector<1x64x32xf32>
    %212 = vector.shape_cast %211 : vector<1x64x32xf32> to vector<64x32xf32>
    %c30_203 = arith.constant 30 : index
    %c0_204 = arith.constant 0 : index
    %c0_205 = arith.constant 0 : index
    %213 = vector.load %arg3[%c30_203, %c0_204, %c0_205] : memref<32x16x32xf32, #tpu.memory_space<vmem>>, vector<1x4x8xf32>
    %214 = vector.shape_cast %213 : vector<1x4x8xf32> to vector<4x8xf32>
    %cst_206 = arith.constant dense<0.000000e+00> : vector<8x32xf32>
    %215 = tpu.matmul %210, %212, %cst_206 {dimension_numbers = #tpu.dot_dimension_numbers<[1], [0], [0], [1], [0, 0, 1, 1], [], []>} : vector<8x64xf32>, vector<64x32xf32>, vector<8x32xf32> -> vector<8x32xf32>
    %cst_207 = arith.constant dense<0.000000e+00> : vector<4x32xf32>
    %216 = tpu.matmul %214, %215, %cst_207 {dimension_numbers = #tpu.dot_dimension_numbers<[1], [0], [0], [1], [0, 0, 1, 1], [], []>} : vector<4x8xf32>, vector<8x32xf32>, vector<4x32xf32> -> vector<4x32xf32>
    %c24 = arith.constant 24 : index
    %c0_208 = arith.constant 0 : index
    %c0_209 = arith.constant 0 : index
    %217 = vector.load %arg2[%c24, %c0_208, %c0_209] : memref<32x128x64xf32, #tpu.memory_space<vmem>>, vector<1x32x32xf32>
    %218 = vector.shape_cast %217 : vector<1x32x32xf32> to vector<32x32xf32>
    %c24_210 = arith.constant 24 : index
    %c0_211 = arith.constant 0 : index
    %c0_212 = arith.constant 0 : index
    %219 = vector.load %arg3[%c24_210, %c0_211, %c0_212] : memref<32x16x32xf32, #tpu.memory_space<vmem>>, vector<1x4x4xf32>
    %220 = vector.shape_cast %219 : vector<1x4x4xf32> to vector<4x4xf32>
    %cst_213 = arith.constant dense<0.000000e+00> : vector<4x32xf32>
    %221 = tpu.matmul %216, %218, %cst_213 {dimension_numbers = #tpu.dot_dimension_numbers<[1], [0], [0], [1], [0, 0, 1, 1], [], []>} : vector<4x32xf32>, vector<32x32xf32>, vector<4x32xf32> -> vector<4x32xf32>
    %cst_214 = arith.constant dense<0.000000e+00> : vector<4x32xf32>
    %222 = tpu.matmul %220, %221, %cst_214 {dimension_numbers = #tpu.dot_dimension_numbers<[1], [0], [0], [1], [0, 0, 1, 1], [], []>} : vector<4x4xf32>, vector<4x32xf32>, vector<4x32xf32> -> vector<4x32xf32>
    %c25 = arith.constant 25 : index
    %c0_215 = arith.constant 0 : index
    %c0_216 = arith.constant 0 : index
    %223 = vector.load %arg2[%c25, %c0_215, %c0_216] : memref<32x128x64xf32, #tpu.memory_space<vmem>>, vector<1x32x32xf32>
    %224 = vector.shape_cast %223 : vector<1x32x32xf32> to vector<32x32xf32>
    %c25_217 = arith.constant 25 : index
    %c0_218 = arith.constant 0 : index
    %c0_219 = arith.constant 0 : index
    %225 = vector.load %arg3[%c25_217, %c0_218, %c0_219] : memref<32x16x32xf32, #tpu.memory_space<vmem>>, vector<1x4x4xf32>
    %226 = vector.shape_cast %225 : vector<1x4x4xf32> to vector<4x4xf32>
    %cst_220 = arith.constant dense<0.000000e+00> : vector<4x32xf32>
    %227 = tpu.matmul %216, %224, %cst_220 {dimension_numbers = #tpu.dot_dimension_numbers<[1], [0], [0], [1], [0, 0, 1, 1], [], []>} : vector<4x32xf32>, vector<32x32xf32>, vector<4x32xf32> -> vector<4x32xf32>
    %cst_221 = arith.constant dense<0.000000e+00> : vector<4x32xf32>
    %228 = tpu.matmul %226, %227, %cst_221 {dimension_numbers = #tpu.dot_dimension_numbers<[1], [0], [0], [1], [0, 0, 1, 1], [], []>} : vector<4x4xf32>, vector<4x32xf32>, vector<4x32xf32> -> vector<4x32xf32>
    %229 = arith.addf %222, %228 : vector<4x32xf32>
    %c26 = arith.constant 26 : index
    %c0_222 = arith.constant 0 : index
    %c0_223 = arith.constant 0 : index
    %230 = vector.load %arg2[%c26, %c0_222, %c0_223] : memref<32x128x64xf32, #tpu.memory_space<vmem>>, vector<1x32x32xf32>
    %231 = vector.shape_cast %230 : vector<1x32x32xf32> to vector<32x32xf32>
    %c26_224 = arith.constant 26 : index
    %c0_225 = arith.constant 0 : index
    %c0_226 = arith.constant 0 : index
    %232 = vector.load %arg3[%c26_224, %c0_225, %c0_226] : memref<32x16x32xf32, #tpu.memory_space<vmem>>, vector<1x4x4xf32>
    %233 = vector.shape_cast %232 : vector<1x4x4xf32> to vector<4x4xf32>
    %cst_227 = arith.constant dense<0.000000e+00> : vector<4x32xf32>
    %234 = tpu.matmul %216, %231, %cst_227 {dimension_numbers = #tpu.dot_dimension_numbers<[1], [0], [0], [1], [0, 0, 1, 1], [], []>} : vector<4x32xf32>, vector<32x32xf32>, vector<4x32xf32> -> vector<4x32xf32>
    %cst_228 = arith.constant dense<0.000000e+00> : vector<4x32xf32>
    %235 = tpu.matmul %233, %234, %cst_228 {dimension_numbers = #tpu.dot_dimension_numbers<[1], [0], [0], [1], [0, 0, 1, 1], [], []>} : vector<4x4xf32>, vector<4x32xf32>, vector<4x32xf32> -> vector<4x32xf32>
    %236 = arith.addf %229, %235 : vector<4x32xf32>
    %c8_229 = arith.constant 8 : index
    %c0_230 = arith.constant 0 : index
    %c0_231 = arith.constant 0 : index
    %237 = vector.load %arg4[%c8_229, %c0_230, %c0_231] : memref<10x1x64xf32, #tpu.memory_space<vmem>>, vector<1x1x32xf32>
    %238 = vector.shape_cast %237 : vector<1x1x32xf32> to vector<1x32xf32>
    %239 = vector.broadcast %238 : vector<1x32xf32> to vector<4x32xf32>
    %240 = arith.addf %236, %239 : vector<4x32xf32>
    %cst_232 = arith.constant 0.000000e+00 : f32
    %241 = vector.broadcast %cst_232 : f32 to vector<4x32xf32>
    %242 = arith.maximumf %240, %241 : vector<4x32xf32>
    %c27 = arith.constant 27 : index
    %c0_233 = arith.constant 0 : index
    %c0_234 = arith.constant 0 : index
    %243 = vector.load %arg2[%c27, %c0_233, %c0_234] : memref<32x128x64xf32, #tpu.memory_space<vmem>>, vector<1x32x32xf32>
    %244 = vector.shape_cast %243 : vector<1x32x32xf32> to vector<32x32xf32>
    %c27_235 = arith.constant 27 : index
    %c0_236 = arith.constant 0 : index
    %c0_237 = arith.constant 0 : index
    %245 = vector.load %arg3[%c27_235, %c0_236, %c0_237] : memref<32x16x32xf32, #tpu.memory_space<vmem>>, vector<1x4x4xf32>
    %246 = vector.shape_cast %245 : vector<1x4x4xf32> to vector<4x4xf32>
    %cst_238 = arith.constant dense<0.000000e+00> : vector<4x32xf32>
    %247 = tpu.matmul %242, %244, %cst_238 {dimension_numbers = #tpu.dot_dimension_numbers<[1], [0], [0], [1], [0, 0, 1, 1], [], []>} : vector<4x32xf32>, vector<32x32xf32>, vector<4x32xf32> -> vector<4x32xf32>
    %cst_239 = arith.constant dense<0.000000e+00> : vector<4x32xf32>
    %248 = tpu.matmul %246, %247, %cst_239 {dimension_numbers = #tpu.dot_dimension_numbers<[1], [0], [0], [1], [0, 0, 1, 1], [], []>} : vector<4x4xf32>, vector<4x32xf32>, vector<4x32xf32> -> vector<4x32xf32>
    %c28 = arith.constant 28 : index
    %c0_240 = arith.constant 0 : index
    %c0_241 = arith.constant 0 : index
    %249 = vector.load %arg2[%c28, %c0_240, %c0_241] : memref<32x128x64xf32, #tpu.memory_space<vmem>>, vector<1x32x32xf32>
    %250 = vector.shape_cast %249 : vector<1x32x32xf32> to vector<32x32xf32>
    %c28_242 = arith.constant 28 : index
    %c0_243 = arith.constant 0 : index
    %c0_244 = arith.constant 0 : index
    %251 = vector.load %arg3[%c28_242, %c0_243, %c0_244] : memref<32x16x32xf32, #tpu.memory_space<vmem>>, vector<1x4x4xf32>
    %252 = vector.shape_cast %251 : vector<1x4x4xf32> to vector<4x4xf32>
    %cst_245 = arith.constant dense<0.000000e+00> : vector<4x32xf32>
    %253 = tpu.matmul %242, %250, %cst_245 {dimension_numbers = #tpu.dot_dimension_numbers<[1], [0], [0], [1], [0, 0, 1, 1], [], []>} : vector<4x32xf32>, vector<32x32xf32>, vector<4x32xf32> -> vector<4x32xf32>
    %cst_246 = arith.constant dense<0.000000e+00> : vector<4x32xf32>
    %254 = tpu.matmul %252, %253, %cst_246 {dimension_numbers = #tpu.dot_dimension_numbers<[1], [0], [0], [1], [0, 0, 1, 1], [], []>} : vector<4x4xf32>, vector<4x32xf32>, vector<4x32xf32> -> vector<4x32xf32>
    %255 = arith.addf %248, %254 : vector<4x32xf32>
    %c29 = arith.constant 29 : index
    %c0_247 = arith.constant 0 : index
    %c0_248 = arith.constant 0 : index
    %256 = vector.load %arg2[%c29, %c0_247, %c0_248] : memref<32x128x64xf32, #tpu.memory_space<vmem>>, vector<1x32x32xf32>
    %257 = vector.shape_cast %256 : vector<1x32x32xf32> to vector<32x32xf32>
    %c29_249 = arith.constant 29 : index
    %c0_250 = arith.constant 0 : index
    %c0_251 = arith.constant 0 : index
    %258 = vector.load %arg3[%c29_249, %c0_250, %c0_251] : memref<32x16x32xf32, #tpu.memory_space<vmem>>, vector<1x4x4xf32>
    %259 = vector.shape_cast %258 : vector<1x4x4xf32> to vector<4x4xf32>
    %cst_252 = arith.constant dense<0.000000e+00> : vector<4x32xf32>
    %260 = tpu.matmul %242, %257, %cst_252 {dimension_numbers = #tpu.dot_dimension_numbers<[1], [0], [0], [1], [0, 0, 1, 1], [], []>} : vector<4x32xf32>, vector<32x32xf32>, vector<4x32xf32> -> vector<4x32xf32>
    %cst_253 = arith.constant dense<0.000000e+00> : vector<4x32xf32>
    %261 = tpu.matmul %259, %260, %cst_253 {dimension_numbers = #tpu.dot_dimension_numbers<[1], [0], [0], [1], [0, 0, 1, 1], [], []>} : vector<4x4xf32>, vector<4x32xf32>, vector<4x32xf32> -> vector<4x32xf32>
    %262 = arith.addf %255, %261 : vector<4x32xf32>
    %c9_254 = arith.constant 9 : index
    %c0_255 = arith.constant 0 : index
    %c0_256 = arith.constant 0 : index
    %263 = vector.load %arg4[%c9_254, %c0_255, %c0_256] : memref<10x1x64xf32, #tpu.memory_space<vmem>>, vector<1x1x32xf32>
    %264 = vector.shape_cast %263 : vector<1x1x32xf32> to vector<1x32xf32>
    %265 = vector.broadcast %264 : vector<1x32xf32> to vector<4x32xf32>
    %266 = arith.addf %262, %265 : vector<4x32xf32>
    %267 = arith.addf %266, %216 : vector<4x32xf32>
    %cst_257 = arith.constant 0.000000e+00 : f32
    %268 = vector.broadcast %cst_257 : f32 to vector<4x32xf32>
    %269 = arith.maximumf %267, %268 : vector<4x32xf32>
    %c31 = arith.constant 31 : index
    %c0_258 = arith.constant 0 : index
    %c0_259 = arith.constant 0 : index
    %270 = vector.load %arg2[%c31, %c0_258, %c0_259] : memref<32x128x64xf32, #tpu.memory_space<vmem>>, vector<1x32x16xf32>
    %271 = vector.shape_cast %270 : vector<1x32x16xf32> to vector<32x16xf32>
    %c31_260 = arith.constant 31 : index
    %c0_261 = arith.constant 0 : index
    %c0_262 = arith.constant 0 : index
    %272 = vector.load %arg3[%c31_260, %c0_261, %c0_262] : memref<32x16x32xf32, #tpu.memory_space<vmem>>, vector<1x2x4xf32>
    %273 = vector.shape_cast %272 : vector<1x2x4xf32> to vector<2x4xf32>
    %cst_263 = arith.constant dense<0.000000e+00> : vector<4x16xf32>
    %274 = tpu.matmul %269, %271, %cst_263 {dimension_numbers = #tpu.dot_dimension_numbers<[1], [0], [0], [1], [0, 0, 1, 1], [], []>} : vector<4x32xf32>, vector<32x16xf32>, vector<4x16xf32> -> vector<4x16xf32>
    %cst_264 = arith.constant dense<0.000000e+00> : vector<2x16xf32>
    %275 = tpu.matmul %273, %274, %cst_264 {dimension_numbers = #tpu.dot_dimension_numbers<[1], [0], [0], [1], [0, 0, 1, 1], [], []>} : vector<2x4xf32>, vector<4x16xf32>, vector<2x16xf32> -> vector<2x16xf32>
    %c0_265 = arith.constant 0 : index
    %c0_266 = arith.constant 0 : index
    %c0_267 = arith.constant 0 : index
    %276 = vector.load %arg5[%c0_265, %c0_266, %c0_267] : memref<1x2x16xf32, #tpu.memory_space<vmem>>, vector<1x2x16xf32>
    %277 = vector.shape_cast %276 : vector<1x2x16xf32> to vector<2x16xf32>
    %278 = vector.shape_cast %275 : vector<2x16xf32> to vector<1x2x16xf32>
    tpu.vector_store %arg5[%c0_265, %c0_266, %c0_267], %278 {strides = array<i32>} : memref<1x2x16xf32, #tpu.memory_space<vmem>>, vector<1x2x16xf32>,
    return
  }
  func.func @transform_0(%arg0: i32) -> (i32, i32, i32) {
    %c0_i32 = arith.constant 0 : i32
    %c0_i32_0 = arith.constant 0 : i32
    %c0_i32_1 = arith.constant 0 : i32
    return %arg0, %c0_i32, %c0_i32_0 : i32, i32, i32
  }
  func.func @transform_1(%arg0: i32) -> (i32, i32, i32) {
    %c0_i32 = arith.constant 0 : i32
    %c0_i32_0 = arith.constant 0 : i32
    %c0_i32_1 = arith.constant 0 : i32
    %c0_i32_2 = arith.constant 0 : i32
    return %c0_i32, %c0_i32_0, %c0_i32_1 : i32, i32, i32
  }
  func.func @transform_2(%arg0: i32) -> (i32, i32, i32) {
    %c0_i32 = arith.constant 0 : i32
    %c0_i32_0 = arith.constant 0 : i32
    %c0_i32_1 = arith.constant 0 : i32
    %c0_i32_2 = arith.constant 0 : i32
    return %c0_i32, %c0_i32_0, %c0_i32_1 : i32, i32, i32
  }
  func.func @transform_3(%arg0: i32) -> (i32, i32, i32) {
    %c0_i32 = arith.constant 0 : i32
    %c0_i32_0 = arith.constant 0 : i32
    %c0_i32_1 = arith.constant 0 : i32
    %c0_i32_2 = arith.constant 0 : i32
    return %c0_i32, %c0_i32_0, %c0_i32_1 : i32, i32, i32
  }
  func.func @transform_4(%arg0: i32) -> (i32, i32, i32) {
    %c0_i32 = arith.constant 0 : i32
    %c0_i32_0 = arith.constant 0 : i32
    %c0_i32_1 = arith.constant 0 : i32
    return %arg0, %c0_i32, %c0_i32_0 : i32, i32, i32
  }
}

</mosaic_0001>

<bundles_post_ra>
// kernel: forward.1
= control target key start
LH: loop header
LB: loop body
LE: loop exit
PB: predicated region body
PF: predicated region fallthrough
CT: control target
= control target key end

     0   :  { %s7742_s15 = smov 0   ;;  %s8974_s0 = inlined_call_operand.vmem [shape: f32[2,32,128], index: 0, kind: input, shape index: {}]   ;;  %s8975_s1 = inlined_call_operand.vmem [shape: f32[32,128,64], index: 1, kind: input, shape index: {}]   ;;  %s8976_s2 = inlined_call_operand.vmem [shape: f32[32,16,32], index: 2, kind: input, shape index: {}]   ;;  %s8977_s3 = inlined_call_operand.vmem [shape: f32[10,1,64], index: 3, kind: input, shape index: {}]   ;;  %s8978_s4 = inlined_call_operand.vmem [shape: f32[2,2,16], index: 4, kind: output, shape index: {}]  }
   0x1 LB: > { %s5551_s16 = sadd.s32 4294967295, %s7712_s15   ;;  %p5555_p0 = scmp.ge.s32.totalorder %s7712_s15, 1  ;;  %s7712_s15 = sphi %s7742_s15, %s14_s15  }
   0x2   : > { %p162_p1 = scmp.lt.s32.totalorder %s7712_s15, 3 }
   0x4   : > { %p163_p2 = pnand %p5555_p0, %p162_p1 }
   0x5   : > { %v5559_v0 = vld [vmem:[%s8975_s1 + $0x80] sm:$0xff] (!%p163_p2)  ;;  %v5560_v1 = vld [vmem:[%s8975_s1 + $0x88] sm:$0xff] (!%p163_p2)  ;;  %v5561_v2 = vld [vmem:[%s8975_s1 + $0x90] sm:$0xff] (!%p163_p2)  ;;  %p187_p3 = scmp.lt.s32.totalorder (!%p163_p2), %s5551_s16, 1  ;;  %vm408_vm0 = vcmask (!%p163_p2), 261120   ;;  %vm782_vm1 = vcmask (!%p163_p2), 523264  }
   0x6   : > { %166 = sbr.rel (%p163_p2) target bundleno = 6552 (0x1998), region = 36  ;;  %v7187_v3 = vpack.c.bf16 (!%p163_p2), %v5560_v1, %v5559_v0  ;;  %v5562_v4 = vld [vmem:[%s8975_s1 + $0x98] sm:$0xff] (!%p163_p2)  ;;  %v5563_v6 = vld [vmem:[%s8975_s1 + $0xa0] sm:$0xff] (!%p163_p2)  ;;  %v5564_v7 = vld [vmem:[%s8975_s1 + $0xa8] sm:$0xff] (!%p163_p2)  ;;  %vm951_vm2 = vcmask (!%p163_p2), 130048   ;;  %vm7715_vm3 = vmmov (!%p163_p2), 0  }
   0x7   : > { %v7191_v5 = vpack.c.bf16 (!%p163_p2), %v5562_v4, %v5561_v2  ;;  %v200_v8 = vld [vmem:[%s8975_s1] sm:$0xff] (!%p163_p2)  ;;  %v201_v9 = vld [vmem:[%s8975_s1 + $0x8] sm:$0xff] (!%p163_p2)  ;;  %v7195_v10 = vpack.c.bf16 (!%p163_p2), %v5564_v7, %v5563_v6  ;;  %v202_v12 = vld [vmem:[%s8975_s1 + $0x10] sm:$0xff] (!%p163_p2)  ;;  %vm2968_vm4 = vcmask (!%p163_p2), 64512   ;;  %vm4552_vm5 = vcmask (!%p163_p2), 1043456  }
   0x8   : > { %7188 = vmatprep.subr.bf16.mxu1 (!%p163_p2), %v7187_v3  ;;  %v7155_v11 = vpack.c.bf16 (!%p163_p2), %v201_v9, %v200_v8  ;;  %v203_v13 = vld [vmem:[%s8975_s1 + $0x18] sm:$0xff] (!%p163_p2)  ;;  %v5565_v14 = vld [vmem:[%s8975_s1 + $0xb0] sm:$0xff] (!%p163_p2)  ;;  %v204_v17 = vld [vmem:[%s8975_s1 + $0x20] sm:$0xff] (!%p163_p2)  ;;  %vm4548_vm6 = vcmask (!%p163_p2), 31744   ;;  %vm5496_vm7 = vcmask (!%p163_p2), 123904  }
   0x9   : > { %7190 = vmatpush3.bf16.msra.mxu1 (!%p163_p2), %v7187_v3  ;;  %v5566_v15 = vld [vmem:[%s8975_s1 + $0xb8] sm:$0xff] (!%p163_p2)  ;;  %v7159_v16 = vpack.c.bf16 (!%p163_p2), %v203_v13, %v202_v12  ;;  %v205_v18 = vld [vmem:[%s8975_s1 + $0x28] sm:$0xff] (!%p163_p2)  ;;  %v5567_v21 = vld [vmem:[%s8975_s1 + $0xc0] sm:$0xff] (!%p163_p2) }
   0xa   : > { %7192 = vmatprep.subr.bf16.mxu1 (!%p163_p2), %v7191_v5  ;;  %7156 = vmatprep.subr.bf16.mxu0 (!%p163_p2), %v7155_v11  ;;  %v7199_v20 = vpack.c.bf16 (!%p163_p2), %v5566_v15, %v5565_v14  ;;  %v7163_v22 = vpack.c.bf16 (!%p163_p2), %v205_v18, %v204_v17  ;;  %v5568_v23 = vld [vmem:[%s8975_s1 + $0xc8] sm:$0xff] (!%p163_p2)  ;;  %v206_v24 = vld [vmem:[%s8975_s1 + $0x30] sm:$0xff] (!%p163_p2)  ;;  %v207_v25 = vld [vmem:[%s8975_s1 + $0x38] sm:$0xff] (!%p163_p2) }
   0xb   : > { %7158 = vmatpush3.bf16.msra.mxu0 (!%p163_p2), %v7155_v11  ;;  %v7203_v26 = vpack.c.bf16 (!%p163_p2), %v5568_v23, %v5567_v21  ;;  %v5569_v27 = vld [vmem:[%s8975_s1 + $0xd0] sm:$0xff] (!%p163_p2)  ;;  %v7167_v28 = vpack.c.bf16 (!%p163_p2), %v207_v25, %v206_v24  ;;  %v5570_v29 = vld [vmem:[%s8975_s1 + $0xd8] sm:$0xff] (!%p163_p2)  ;;  %v208_v30 = vld [vmem:[%s8975_s1 + $0x40] sm:$0xff] (!%p163_p2) }
   0xc   : > { %7160 = vmatprep.subr.bf16.mxu0 (!%p163_p2), %v7159_v16  ;;  %v209_v31 = vld [vmem:[%s8975_s1 + $0x48] sm:$0xff] (!%p163_p2)  ;;  %v7207_v32 = vpack.c.bf16 (!%p163_p2), %v5570_v29, %v5569_v27  ;;  %v5571_v33 = vld [vmem:[%s8975_s1 + $0xe0] sm:$0xff] (!%p163_p2)  ;;  %v210_v36 = vld [vmem:[%s8975_s1 + $0x50] sm:$0xff] (!%p163_p2) }
   0xd   : > { %s8980_s16 = smov (!%p187_p3, %s5551_s16), 1  ;;  %7194 = vmatpush3.bf16.msra.mxu1 %v7191_v5  ;;  %v7171_v34 = vpack.c.bf16 %v209_v31, %v208_v30  ;;  %v5572_v35 = vld [vmem:[%s8975_s1 + $0xe8] sm:$0xff]  ;;  %v211_v37 = vld [vmem:[%s8975_s1 + $0x58] sm:$0xff]  ;;  %v5573_v39 = vld [vmem:[%s8975_s1 + $0xf0] sm:$0xff] }
   0xe   : > { %s5944_s7 = sshll.u32 %s8980_s16, 5  ;;  %7196 = vmatprep.subr.bf16.mxu1 %v7195_v10  ;;  %v7211_v38 = vpack.c.bf16 %v5572_v35, %v5571_v33  ;;  %v7175_v40 = vpack.c.bf16 %v211_v37, %v210_v36  ;;  %v5574_v41 = vld [vmem:[%s8975_s1 + $0xf8] sm:$0xff]  ;;  %v212_v42 = vld [vmem:[%s8975_s1 + $0x60] sm:$0xff]  ;;  %v213_v43 = vld [vmem:[%s8975_s1 + $0x68] sm:$0xff]  ;;  %s5558_s29 = sshll.u32 %s8980_s16, 1 }
   0xf   : > { %s7786_s14 = scalar_lea.vmem %s8974_s0, %s5944_s7  ;;  %7162 = vmatpush3.bf16.msra.mxu0 %v7159_v16  ;;  %v7215_v44 = vpack.c.bf16 %v5574_v41, %v5573_v39  ;;  %v5581_v45 = vld [vmem:[%s8975_s1 + $0x100] sm:$0xff]  ;;  %v7179_v46 = vpack.c.bf16 %v213_v43, %v212_v42  ;;  %v5582_v47 = vld [vmem:[%s8975_s1 + $0x108] sm:$0xff]  ;;  %v214_v48 = vld [vmem:[%s8975_s1 + $0x70] sm:$0xff]  ;;  %s195_s6 = scalar_lea.vmem %s8978_s4, %s5558_s29 }
  0x10   : > { %v7801_v19 = vld [vmem:[%s7786_s14] sm:$0xff]  ;;  %7164 = vmatprep.subr.bf16.mxu0 %v7163_v22  ;;  %v215_v49 = vld [vmem:[%s8975_s1 + $0x78] sm:$0xff]  ;;  %v7235_v50 = vpack.c.bf16 %v5582_v47, %v5581_v45  ;;  %v5583_v52 = vld [vmem:[%s8975_s1 + $0x110] sm:$0xff] }
  0x11   : > { %6414 = vmatprep.mubr.f32.mxu1 %v7801_v19  ;;  %6376 = vmatprep.mubr.f32.mxu0 %v7801_v19  ;;  %v7183_v51 = vpack.c.bf16 %v215_v49, %v214_v48  ;;  %v5584_v53 = vld [vmem:[%s8975_s1 + $0x118] sm:$0xff]  ;;  %v197_v54 = vld [vmem:[%s7786_s14 + $0x8] sm:$0xff]  ;;  %v198_v56 = vld [vmem:[%s7786_s14 + $0x10] sm:$0xff] }
  0x12   : > { %7198 = vmatpush3.bf16.msra.mxu1 %v7195_v10  ;;  %v7239_v55 = vpack.c.bf16 %v5584_v53, %v5583_v52  ;;  %v5585_v57 = vld [vmem:[%s8975_s1 + $0x120] sm:$0xff]  ;;  %v5586_v58 = vld [vmem:[%s8975_s1 + $0x128] sm:$0xff]  ;;  %v199_v59 = vld [vmem:[%s7786_s14 + $0x18] sm:$0xff] }
  0x13   : > { %7200 = vmatprep.subr.bf16.mxu1 %v7199_v20  ;;  %7166 = vmatpush3.bf16.msra.mxu0 %v7163_v22  ;;  %v7243_v60 = vpack.c.bf16 %v5586_v58, %v5585_v57  ;;  %v5587_v61 = vld [vmem:[%s8975_s1 + $0x130] sm:$0xff]  ;;  %v5588_v62 = vld [vmem:[%s8975_s1 + $0x138] sm:$0xff]  ;;  %v5589_v0 = vld [vmem:[%s8975_s1 + $0x140] sm:$0xff] }
  0x14   : > { %7168 = vmatprep.subr.bf16.mxu0 %v7167_v28  ;;  %v7247_v63 = vpack.c.bf16 %v5588_v62, %v5587_v61  ;;  %v5590_v1 = vld [vmem:[%s8975_s1 + $0x148] sm:$0xff]  ;;  %v5591_v3 = vld [vmem:[%s8975_s1 + $0x150] sm:$0xff]  ;;  %v5592_v4 = vld [vmem:[%s8975_s1 + $0x158] sm:$0xff] }
  0x15   : > { %v7251_v2 = vpack.c.bf16 %v5590_v1, %v5589_v0  ;;  %v7255_v5 = vpack.c.bf16 %v5592_v4, %v5591_v3  ;;  %v5593_v6 = vld [vmem:[%s8975_s1 + $0x160] sm:$0xff]  ;;  %v5594_v7 = vld [vmem:[%s8975_s1 + $0x168] sm:$0xff]  ;;  %v5595_v9 = vld [vmem:[%s8975_s1 + $0x170] sm:$0xff] }
  0x16   : > { %7202 = vmatpush3.bf16.msra.mxu1 %v7199_v20  ;;  %v7259_v8 = vpack.c.bf16 %v5594_v7, %v5593_v6  ;;  %v5596_v10 = vld [vmem:[%s8975_s1 + $0x178] sm:$0xff]  ;;  %v5575_v12 = vld [vmem:[%s8976_s2 + $0x10] sm:$0xff]  ;;  %v5614_v13 = vld [vmem:[%s8975_s1 + $0x200] sm:$0xff] }
  0x17   : > { %7204 = vmatprep.subr.bf16.mxu1 %v7203_v26  ;;  %7170 = vmatpush3.bf16.msra.mxu0 %v7167_v28  ;;  %v7263_v11 = vpack.c.bf16 %v5596_v10, %v5595_v9  ;;  %v5615_v14 = vld [vmem:[%s8975_s1 + $0x208] sm:$0xff]  ;;  %v5616_v16 = vld [vmem:[%s8975_s1 + $0x210] sm:$0xff]  ;;  %v5617_v17 = vld [vmem:[%s8975_s1 + $0x218] sm:$0xff] }
  0x18   : > { %7172 = vmatprep.subr.bf16.mxu0 %v7171_v34  ;;  %v7291_v15 = vpack.c.bf16 %v5615_v14, %v5614_v13  ;;  %v7295_v18 = vpack.c.bf16 %v5617_v17, %v5616_v16  ;;  %v5619_v20 = vld [vmem:[%s8975_s1 + $0x228] sm:$0xff]  ;;  %v5597_v37 = vld [vmem:[%s8976_s2 + $0x20] sm:$0xff]  ;;  %v5604_v47 = vld [vmem:[%s8975_s1 + $0x190] sm:$0xff] }
  0x19   : > { %v217_v36 = vld [vmem:[%s8976_s2 + $0x8] sm:$0xff]  ;;  %v5602_v41 = vld [vmem:[%s8975_s1 + $0x180] sm:$0xff]  ;;  %v5605_v48 = vld [vmem:[%s8975_s1 + $0x198] sm:$0xff] }
  0x1a   : > { %7206 = vmatpush3.bf16.msra.mxu1 %v7203_v26  ;;  %v5603_v42 = vld [vmem:[%s8975_s1 + $0x188] sm:$0xff]  ;;  %v5620_v57 = vld [vmem:[%s8975_s1 + $0x230] sm:$0xff]  ;;  %v5621_v58 = vld [vmem:[%s8975_s1 + $0x238] sm:$0xff] }
  0x1b   : > { %7208 = vmatprep.subr.bf16.mxu1 %v7207_v32  ;;  %7174 = vmatpush3.bf16.msra.mxu0 %v7171_v34  ;;  %v216_v34 = vld [vmem:[%s8976_s2] sm:$0xff]  ;;  %v5598_v49 = vld [vmem:[%s8976_s2 + $0x28] sm:$0xff]  ;;  %v5610_v13 = vld [vmem:[%s8976_s2 + $0x30] sm:$0xff] }
  0x1c   : > { %7176 = vmatprep.subr.bf16.mxu0 %v7175_v40  ;;  %v5607_v52 = vld [vmem:[%s8975_s1 + $0x1a8] sm:$0xff]  ;;  %v5622_v3 = vld [vmem:[%s8976_s2 + $0x40] sm:$0xff]  ;;  %v5633_v16 = vld [vmem:[%s8975_s1 + $0x298] sm:$0xff] }
  0x1d   : > { %v5630_v10 = vld [vmem:[%s8975_s1 + $0x280] sm:$0xff]  ;;  %v5611_v17 = vld [vmem:[%s8976_s2 + $0x38] sm:$0xff] }
  0x1e   : > { %7210 = vmatpush3.bf16.msra.mxu1 %v7207_v32  ;;  %v5576_v32 = vld [vmem:[%s8976_s2 + $0x18] sm:$0xff] }
  0x1f   : > { %7212 = vmatprep.subr.bf16.mxu1 %v7211_v38  ;;  %7178 = vmatpush3.bf16.msra.mxu0 %v7175_v40 }
  0x20   : > { %7180 = vmatprep.subr.bf16.mxu0 %v7179_v46 }
  0x22   : > { %7214 = vmatpush3.bf16.msra.mxu1 %v7211_v38 }
  0x23   : > { %7216 = vmatprep.subr.bf16.mxu1 %v7215_v44  ;;  %7182 = vmatpush3.bf16.msra.mxu0 %v7179_v46  ;;  %v7275_v46 = vpack.c.bf16 %v5603_v42, %v5602_v41  ;;  %v5658_v42 = vld [vmem:[%s8975_s1 + $0x380] sm:$0xff] }
  0x24   : > { %7184 = vmatprep.subr.bf16.mxu0 %v7183_v51 }
  0x26   : > { %7218 = vmatpush3.bf16.msra.mxu1 %v7215_v44 }
  0x27   : > { %7236 = vmatprep.subr.bf16.mxu1 %v7235_v50  ;;  %7186 = vmatpush3.bf16.msra.mxu0 %v7183_v51  ;;  %v5606_v51 = vld [vmem:[%s8975_s1 + $0x1a0] sm:$0xff] }
  0x28   : > { %v7283_v53 = vpack.c.bf16 %v5607_v52, %v5606_v51  ;;  %v5661_v51 = vld [vmem:[%s8975_s1 + $0x398] sm:$0xff] }
  0x29   : > { %6415 = vmatmul.mubr.f32.vlgmr.msra.gmra.mrb[0].mxu1 %v197_v54 }
  0x2a   : > { %7238 = vmatpush3.bf16.msra.mxu1 %v7235_v50  ;;  %6417 = vmatprep.mubr.f32.mxu1 %v198_v56  ;;  %v7279_v50 = vpack.c.bf16 %v5605_v48, %v5604_v47 }
  0x2b   : > { %7240 = vmatprep.subr.bf16.mxu1 %v7239_v55  ;;  %6377 = vmatmul.mubr.f32.vlgmr.msra.gmra.mrb[0].mxu0 %v197_v54 }
  0x2c   : > { %6379 = vmatprep.mubr.f32.mxu0 %v198_v56 }
  0x2d   : > { %6418 = vmatmul.mubr.f32.gmra.mrb[2].mxu1 %v199_v59 }
  0x2e   : > { %7242 = vmatpush3.bf16.msra.mxu1 %v7239_v55  ;;  %6474 = vmatprep.mubr.f32.mxu1 %v7801_v19  ;;  %v5618_v19 = vld [vmem:[%s8975_s1 + $0x220] sm:$0xff]  ;;  %v5609_v55 = vld [vmem:[%s8975_s1 + $0x1b8] sm:$0xff] }
  0x2f   : > { %7244 = vmatprep.subr.bf16.mxu1 %v7243_v60  ;;  %6380 = vmatmul.mubr.f32.gmra.mrb[2].mxu0 %v199_v59  ;;  %v7299_v21 = vpack.c.bf16 %v5619_v20, %v5618_v19  ;;  %v5634_v19 = vld [vmem:[%s8975_s1 + $0x2a0] sm:$0xff]  ;;  %v5635_v20 = vld [vmem:[%s8975_s1 + $0x2a8] sm:$0xff] }
  0x30   : > { %6428 = vmatprep.mubr.msk.f32.mxu0 %vm408_vm0, %v5575_v12  ;;  %v5623_v12 = vld [vmem:[%s8976_s2 + $0x48] sm:$0xff] }
  0x32   : > { %7246 = vmatpush3.bf16.msra.mxu1 %v7243_v60  ;;  %v5601_v60 = vld [vmem:[%s8977_s3] ss:$0 sm:$0xff] }
  0x33   : > { %7248 = vmatprep.subr.bf16.mxu1 %v7247_v63 }
  0x36   : > { %7250 = vmatpush3.bf16.msra.mxu1 %v7247_v63 }
  0x37   : > { %7252 = vmatprep.subr.bf16.mxu1 %v7251_v2 }
  0x3a   : > { %7254 = vmatpush3.bf16.msra.mxu1 %v7251_v2 }
  0x3b   : > { %7256 = vmatprep.subr.bf16.mxu1 %v7255_v5 }
  0x3e   : > { %7258 = vmatpush3.bf16.msra.mxu1 %v7255_v5 }
  0x3f   : > { %7260 = vmatprep.subr.bf16.mxu1 %v7259_v8 }
  0x42   : > { %7262 = vmatpush3.bf16.msra.mxu1 %v7259_v8 }
  0x43   : > { %7264 = vmatprep.subr.bf16.mxu1 %v7263_v11 }
  0x46   : > { %7266 = vmatpush3.bf16.msra.mxu1 %v7263_v11  ;;  %v5631_v11 = vld [vmem:[%s8975_s1 + $0x288] sm:$0xff] }
  0x47   : > { %7292 = vmatprep.subr.bf16.mxu1 %v7291_v15  ;;  %v7315_v14 = vpack.c.bf16 %v5631_v11, %v5630_v10  ;;  %v5676_v11 = vld [vmem:[%s8975_s1 + $0x410] sm:$0xff] }
  0x49   : > { %6475 = vmatmul.mubr.f32.vlgmr.msra.gmra.mrb[4].mxu1 %v197_v54  ;;  %v5608_v54 = vld [vmem:[%s8975_s1 + $0x1b0] sm:$0xff] }
  0x4a   : > { %6477 = vmatprep.mubr.f32.mxu1 %v198_v56  ;;  %7294 = vmatpush3.bf16.msra.mxu1 %v7291_v15  ;;  %v7287_v56 = vpack.c.bf16 %v5609_v55, %v5608_v54  ;;  %v5632_v15 = vld [vmem:[%s8975_s1 + $0x290] sm:$0xff]  ;;  %v5662_v55 = vld [vmem:[%s8975_s1 + $0x3a0] sm:$0xff] }
  0x4b   : > { %7296 = vmatprep.subr.bf16.mxu1 %v7295_v18 }
  0x4d   : > { %6478 = vmatmul.mubr.f32.gmra.mrb[6].mxu1 %v199_v59  ;;  %v7303_v59 = vpack.c.bf16 %v5621_v58, %v5620_v57  ;;  %v5664_v58 = vld [vmem:[%s8975_s1 + $0x3b0] sm:$0xff] }
  0x4e   : > { %7298 = vmatpush3.bf16.msra.mxu1 %v7295_v18  ;;  %v7319_v18 = vpack.c.bf16 %v5633_v16, %v5632_v15  ;;  %v5678_v15 = vld [vmem:[%s8975_s1 + $0x420] sm:$0xff]  ;;  %v5679_v16 = vld [vmem:[%s8975_s1 + $0x428] sm:$0xff] }
  0x4f   : > { %7300 = vmatprep.subr.bf16.mxu1 %v7299_v21 }
  0x52   : > { %7302 = vmatpush3.bf16.msra.mxu1 %v7299_v21  ;;  %v7323_v21 = vpack.c.bf16 %v5635_v20, %v5634_v19  ;;  %v5681_v19 = vld [vmem:[%s8975_s1 + $0x438] sm:$0xff] }
  0x53   : > { %7304 = vmatprep.subr.bf16.mxu1 %v7303_v59 }
  0x56   : > { %7306 = vmatpush3.bf16.msra.mxu1 %v7303_v59  ;;  %v5665_v59 = vld [vmem:[%s8975_s1 + $0x3b8] sm:$0xff] }
  0xfc   : > { %v6416_v22 = vpop.f32.mrb[0].mxu1 }
  0xfd   : > { %v389_v23 = vpop.f32.mrb[1].mxu1 }
  0xfe   : > { %v7219_v24 = vpack.c.bf16 %v6416_v22, %v389_v23  ;;  %v6378_v27 = vpop.f32.mrb[0].mxu0  ;;  %v5636_v22 = vld [vmem:[%s8975_s1 + $0x2b0] sm:$0xff]  ;;  %v5637_v23 = vld [vmem:[%s8975_s1 + $0x2b8] sm:$0xff] }
  0xff   : > { %v284_v29 = vpop.f32.mrb[1].mxu0 }
 0x100   : > { %7220 = vmatprep.subr.bf16.mxu0 %v7219_v24  ;;  %v6419_v25 = vpop.f32.mrb[2].mxu1  ;;  %v7227_v30 = vpack.c.bf16 %v6378_v27, %v284_v29  ;;  %v5647_v27 = vld [vmem:[%s8975_s1 + $0x308] sm:$0xff] }
 0x101   : > { %7222 = vmatpush3.bf16.msra.mxu0 %v7219_v24  ;;  %v399_v26 = vpop.f32.mrb[3].mxu1  ;;  %v7327_v24 = vpack.c.bf16 %v5637_v23, %v5636_v22  ;;  %v5690_v22 = vld [vmem:[%s8975_s1 + $0x480] sm:$0xff]  ;;  %v5691_v23 = vld [vmem:[%s8975_s1 + $0x488] sm:$0xff] }
 0x102   : > { %v7223_v28 = vpack.c.bf16 %v6419_v25, %v399_v26  ;;  %v6381_v31 = vpop.f32.mrb[2].mxu0  ;;  %v5638_v25 = vld [vmem:[%s8976_s2 + $0x50] sm:$0xff]  ;;  %v5646_v26 = vld [vmem:[%s8975_s1 + $0x300] sm:$0xff] }
 0x103   : > { %v294_v33 = vpop.f32.mrb[3].mxu0  ;;  %v7335_v29 = vpack.c.bf16 %v5647_v27, %v5646_v26  ;;  %v5693_v26 = vld [vmem:[%s8975_s1 + $0x498] sm:$0xff] }
 0x104   : > { %7224 = vmatprep.subr.bf16.mxu0 %v7223_v28  ;;  %v7231_v35 = vpack.c.bf16 %v6381_v31, %v294_v33  ;;  %v5651_v33 = vld [vmem:[%s8975_s1 + $0x328] sm:$0xff] }
 0x105   : > { %7226 = vmatpush3.bf16.msra.mxu0 %v7223_v28  ;;  %v5648_v28 = vld [vmem:[%s8975_s1 + $0x310] sm:$0xff]  ;;  %7336 = vmatprep.subr.bf16.mxu1 %v7335_v29 }
 0x106   : > { %7228 = vmatprep.subr.bf16.mxu0 %v7227_v30 }
 0x108   : > { %6429 = vmatmul.mubr.msk.f32.vlgmr.msra.gmra.mrb[4].mxu0 %vm408_vm0, %v5576_v32  ;;  %v5650_v32 = vld [vmem:[%s8975_s1 + $0x320] sm:$0xff] }
 0x109   : > { %7230 = vmatpush3.bf16.msra.mxu0 %v7227_v30  ;;  %6439 = vmatprep.mubr.msk.f32.mxu0 %vm408_vm0, %v216_v34  ;;  %v5649_v30 = vld [vmem:[%s8975_s1 + $0x318] sm:$0xff]  ;;  %v7343_v34 = vpack.c.bf16 %v5651_v33, %v5650_v32 }
 0x10a   : > { %7232 = vmatprep.subr.bf16.mxu0 %v7231_v35  ;;  %v7339_v31 = vpack.c.bf16 %v5649_v30, %v5648_v28  ;;  %v5701_v28 = vld [vmem:[%s8975_s1 + $0x500] sm:$0xff] }
 0x10d   : > { %7234 = vmatpush3.bf16.msra.mxu0 %v7231_v35 }
 0x110   : > { %6440 = vmatmul.mubr.msk.f32.vlgmr.msra.gmra.mrb[4].mxu0 %vm408_vm0, %v217_v36 }
 0x111   : > { %6488 = vmatprep.mubr.msk.f32.mxu0 %vm408_vm0, %v5597_v37 }
 0x11c   : > { %v6476_v38 = vpop.f32.mrb[4].mxu1 }
 0x11d   : > { %v657_v39 = vpop.f32.mrb[5].mxu1 }
 0x11e   : > { %v7267_v40 = vpack.c.bf16 %v6476_v38, %v657_v39  ;;  %v5639_v38 = vld [vmem:[%s8976_s2 + $0x58] sm:$0xff]  ;;  %v5652_v39 = vld [vmem:[%s8975_s1 + $0x330] sm:$0xff] }
 0x120   : > { %v6479_v43 = vpop.f32.mrb[6].mxu1  ;;  %7268 = vmatprep.subr.bf16.mxu0 %v7267_v40 }
 0x121   : > { %v667_v44 = vpop.f32.mrb[7].mxu1  ;;  %7270 = vmatpush3.bf16.msra.mxu0 %v7267_v40  ;;  %v5653_v40 = vld [vmem:[%s8975_s1 + $0x338] sm:$0xff] }
 0x122   : > { %v7271_v45 = vpack.c.bf16 %v6479_v43, %v667_v44  ;;  %v7347_v41 = vpack.c.bf16 %v5653_v40, %v5652_v39  ;;  %v5659_v43 = vld [vmem:[%s8975_s1 + $0x388] sm:$0xff]  ;;  %v5705_v40 = vld [vmem:[%s8975_s1 + $0x520] sm:$0xff] }
 0x123   : > { %v7351_v44 = vpack.c.bf16 %v5659_v43, %v5658_v42  ;;  %v5695_v39 = vld [vmem:[%s8975_s1 + $0x4a8] sm:$0xff] }
 0x124   : > { %7272 = vmatprep.subr.bf16.mxu0 %v7271_v45  ;;  %v5706_v42 = vld [vmem:[%s8975_s1 + $0x528] sm:$0xff] }
 0x125   : > { %7274 = vmatpush3.bf16.msra.mxu0 %v7271_v45  ;;  %v5645_v45 = vld [vmem:[%s8977_s3 + $0x1] ss:$0 sm:$0xff]  ;;  %v7419_v43 = vpack.c.bf16 %v5706_v42, %v5705_v40  ;;  %v5777_v42 = vld [vmem:[%s8975_s1 + $0x808] sm:$0xff] }
 0x126   : > { %7276 = vmatprep.subr.bf16.mxu0 %v7275_v46 }
 0x128   : > { %6489 = vmatmul.mubr.msk.f32.vlgmr.msra.gmra.mrb[4].mxu0 %vm408_vm0, %v5598_v49 }
 0x129   : > { %7278 = vmatpush3.bf16.msra.mxu0 %v7275_v46 }
 0x12a   : > { %7280 = vmatprep.subr.bf16.mxu0 %v7279_v50 }
 0x12d   : > { %7282 = vmatpush3.bf16.msra.mxu0 %v7279_v50  ;;  %v5660_v50 = vld [vmem:[%s8975_s1 + $0x390] sm:$0xff] }
 0x12e   : > { %7284 = vmatprep.subr.bf16.mxu0 %v7283_v53  ;;  %v7355_v54 = vpack.c.bf16 %v5661_v51, %v5660_v50  ;;  %v5689_v50 = vld [vmem:[%s8977_s3 + $0x2] ss:$0 sm:$0xff] }
 0x131   : > { %7286 = vmatpush3.bf16.msra.mxu0 %v7283_v53 }
 0x132   : > { %7288 = vmatprep.subr.bf16.mxu0 %v7287_v56 }
 0x135   : > { %7290 = vmatpush3.bf16.msra.mxu0 %v7287_v56  ;;  %v5663_v56 = vld [vmem:[%s8975_s1 + $0x3a8] sm:$0xff] }
 0x136   : > { %v7359_v57 = vpack.c.bf16 %v5663_v56, %v5662_v55 }
 0x1fb   : > { %v6490_v61 = vpop.f32.mrb[4].mxu0 }
 0x1fc   : > { %v767_v62 = vadd.f32 %v6490_v61, %v5601_v60  ;;  %v748_v63 = vpop.f32.mrb[5].mxu0  ;;  %v5666_v61 = vld [vmem:[%s8976_s2 + $0x70] sm:$0xff] }
 0x1fd   : > { %v766_v0 = vadd.f32 %v5601_v60, %v748_v63  ;;  %v7363_v60 = vpack.c.bf16 %v5665_v59, %v5664_v58  ;;  %v7714_v59 = vmov 0.0|0.0  }
 0x1fe   : > { %v7988_v2 = vmax.f32 %v767_v62, 0.0 }
 0x1ff   : > { %v7986_v1 = vmax.f32 %v766_v0, 0.0 }
 0x201   : > { %6507 = vmatprep.mubr.msk.f32.mxu0 %vm782_vm1, %v7986_v1  ;;  %6526 = vmatprep.mubr.msk.f32.mxu1 %vm782_vm1, %v7986_v1 }
 0x202   : > { %6508 = vmatmul.mubr.msk.f32.vlgmr.msra.gmra.mrb[6].mxu0 %vm782_vm1, %v7988_v2  ;;  %6527 = vmatmul.mubr.msk.f32.vlgmr.msra.gmra.mrb[8].mxu1 %vm782_vm1, %v7988_v2 }
 0x203   : > { %6533 = vmatprep.mubr.msk.f32.mxu0 %vm951_vm2, %v5622_v3  ;;  %7338 = vmatpush3.bf16.msra.mxu1 %v7335_v29  ;;  %v5702_v29 = vld [vmem:[%s8975_s1 + $0x508] sm:$0xff] }
 0x204   : > { %7340 = vmatprep.subr.bf16.mxu1 %v7339_v31  ;;  %v7411_v33 = vpack.c.bf16 %v5702_v29, %v5701_v28  ;;  %v5752_v29 = vld [vmem:[%s8975_s1 + $0x700] sm:$0xff] }
 0x207   : > { %7342 = vmatpush3.bf16.msra.mxu1 %v7339_v31 }
 0x208   : > { %7344 = vmatprep.subr.bf16.mxu1 %v7343_v34 }
 0x20b   : > { %7346 = vmatpush3.bf16.msra.mxu1 %v7343_v34  ;;  %v5703_v34 = vld [vmem:[%s8975_s1 + $0x510] sm:$0xff] }
 0x20c   : > { %7348 = vmatprep.subr.bf16.mxu1 %v7347_v41 }
 0x20f   : > { %7350 = vmatpush3.bf16.msra.mxu1 %v7347_v41 }
 0x210   : > { %7352 = vmatprep.subr.bf16.mxu1 %v7351_v44 }
 0x2d5   : > { %v6509_v4 = vpop.f32.mrb[6].mxu0  ;;  %v6528_v5 = vpop.f32.mrb[8].mxu1 }
 0x2d6   : > { %v855_v6 = vpop.f32.mrb[7].mxu0  ;;  %v942_v7 = vpop.f32.mrb[9].mxu1 }
 0x2d7   : > { %v7311_v8 = vpack.c.bf16 %v6509_v4, %v855_v6  ;;  %v7307_v9 = vpack.c.bf16 %v6528_v5, %v942_v7  ;;  %v5674_v6 = vld [vmem:[%s8975_s1 + $0x400] sm:$0xff]  ;;  %v5675_v7 = vld [vmem:[%s8975_s1 + $0x408] sm:$0xff] }
 0x2d8   : > { %v7375_v10 = vpack.c.bf16 %v5675_v7, %v5674_v6  ;;  %v5716_v7 = vld [vmem:[%s8975_s1 + $0x590] sm:$0xff] }
 0x2d9   : > { %7308 = vmatprep.subr.bf16.mxu0 %v7307_v9 }
 0x2da   : > { %7310 = vmatpush3.bf16.msra.mxu0 %v7307_v9  ;;  %v5654_v9 = vld [vmem:[%s8976_s2 + $0x60] sm:$0xff] }
 0x2db   : > { %7312 = vmatprep.subr.bf16.mxu0 %v7311_v8 }
 0x2dd   : > { %6534 = vmatmul.mubr.msk.f32.vlgmr.msra.gmra.mrb[8].mxu0 %vm951_vm2, %v5623_v12  ;;  %v5677_v12 = vld [vmem:[%s8975_s1 + $0x418] sm:$0xff] }
 0x2de   : > { %7314 = vmatpush3.bf16.msra.mxu0 %v7311_v8  ;;  %6540 = vmatprep.mubr.msk.f32.mxu0 %vm951_vm2, %v5610_v13  ;;  %v5667_v8 = vld [vmem:[%s8976_s2 + $0x78] sm:$0xff]  ;;  %v5655_v13 = vld [vmem:[%s8976_s2 + $0x68] sm:$0xff] }
 0x2df   : > { %7316 = vmatprep.subr.bf16.mxu0 %v7315_v14 }
 0x2e5   : > { %6541 = vmatmul.mubr.msk.f32.vlgmr.msra.gmra.mrb[8].mxu0 %vm951_vm2, %v5611_v17  ;;  %v7383_v17 = vpack.c.bf16 %v5679_v16, %v5678_v15  ;;  %v5721_v15 = vld [vmem:[%s8975_s1 + $0x5b8] sm:$0xff] }
 0x2e6   : > { %7318 = vmatpush3.bf16.msra.mxu0 %v7315_v14  ;;  %6559 = vmatprep.mubr.msk.f32.mxu0 %vm782_vm1, %v7986_v1  ;;  %v7379_v14 = vpack.c.bf16 %v5677_v12, %v5676_v11  ;;  %v5718_v11 = vld [vmem:[%s8975_s1 + $0x5a0] sm:$0xff]  ;;  %v5719_v12 = vld [vmem:[%s8975_s1 + $0x5a8] sm:$0xff] }
 0x2e7   : > { %7320 = vmatprep.subr.bf16.mxu0 %v7319_v18 }
 0x2ea   : > { %7322 = vmatpush3.bf16.msra.mxu0 %v7319_v18  ;;  %v5680_v18 = vld [vmem:[%s8975_s1 + $0x430] sm:$0xff] }
 0x2eb   : > { %7324 = vmatprep.subr.bf16.mxu0 %v7323_v21  ;;  %v7387_v20 = vpack.c.bf16 %v5681_v19, %v5680_v18  ;;  %v5740_v18 = vld [vmem:[%s8975_s1 + $0x688] sm:$0xff] }
 0x2ee   : > { %7326 = vmatpush3.bf16.msra.mxu0 %v7323_v21  ;;  %v5682_v21 = vld [vmem:[%s8976_s2 + $0x80] sm:$0xff] }
 0x2ef   : > { %7328 = vmatprep.subr.bf16.mxu0 %v7327_v24 }
 0x2f2   : > { %7330 = vmatpush3.bf16.msra.mxu0 %v7327_v24  ;;  %v7395_v24 = vpack.c.bf16 %v5691_v23, %v5690_v22  ;;  %v5743_v23 = vld [vmem:[%s8975_s1 + $0x6a0] sm:$0xff] }
 0x2f5   : > { %6560 = vmatmul.mubr.msk.f32.vlgmr.msra.gmra.mrb[10].mxu0 %vm782_vm1, %v7988_v2 }
 0x2f6   : > { %6566 = vmatprep.mubr.msk.f32.mxu0 %vm951_vm2, %v5638_v25  ;;  %v5692_v25 = vld [vmem:[%s8975_s1 + $0x490] sm:$0xff] }
 0x2f7   : > { %v7399_v27 = vpack.c.bf16 %v5693_v26, %v5692_v25  ;;  %v5745_v26 = vld [vmem:[%s8975_s1 + $0x6b0] sm:$0xff] }
 0x3c8   : > { %v6561_v35 = vpop.f32.mrb[10].mxu0 }
 0x3c9   : > { %v1192_v36 = vpop.f32.mrb[11].mxu0 }
 0x3ca   : > { %v7331_v37 = vpack.c.bf16 %v6561_v35, %v1192_v36  ;;  %v5704_v35 = vld [vmem:[%s8975_s1 + $0x518] sm:$0xff]  ;;  %v5683_v36 = vld [vmem:[%s8976_s2 + $0x88] sm:$0xff] }
 0x3cc   : > { %7332 = vmatprep.subr.bf16.mxu0 %v7331_v37 }
 0x3cd   : > { %7334 = vmatpush3.bf16.msra.mxu0 %v7331_v37  ;;  %v7415_v37 = vpack.c.bf16 %v5704_v35, %v5703_v34  ;;  %v5756_v35 = vld [vmem:[%s8975_s1 + $0x720] sm:$0xff] }
 0x3d0   : > { %6567 = vmatmul.mubr.msk.f32.vlgmr.msra.gmra.mrb[8].mxu0 %vm951_vm2, %v5639_v38  ;;  %v5694_v38 = vld [vmem:[%s8975_s1 + $0x4a0] sm:$0xff] }
 0x3d1   : > { %6611 = vmatprep.mubr.msk.f32.mxu0 %vm951_vm2, %v5666_v61  ;;  %v7403_v41 = vpack.c.bf16 %v5695_v39, %v5694_v38  ;;  %v5758_v38 = vld [vmem:[%s8975_s1 + $0x730] sm:$0xff]  ;;  %v5759_v39 = vld [vmem:[%s8975_s1 + $0x738] sm:$0xff] }
 0x3d2   : > { %v7502_v40 = vpack.c.bf16 %v5759_v39, %v5758_v38  ;;  %v5772_v39 = vld [vmem:[%s8975_s1 + $0x7b0] sm:$0xff] }
 0x4a3   : > { %v6568_v46 = vpop.f32.mrb[8].mxu0 }
 0x4a4   : > { %v1293_v47 = vadd.f32 %v6568_v46, %v5645_v45  ;;  %v1273_v48 = vpop.f32.mrb[9].mxu0  ;;  %v5707_v46 = vld [vmem:[%s8975_s1 + $0x530] sm:$0xff] }
 0x4a5   : > { %v1292_v49 = vadd.f32 %v5645_v45, %v1273_v48  ;;  %v5697_v45 = vld [vmem:[%s8975_s1 + $0x4b8] sm:$0xff] }
 0x4a6   : > { %v1295_v53 = vmax.f32 %v1293_v47, 0.0  ;;  %v5708_v48 = vld [vmem:[%s8975_s1 + $0x538] sm:$0xff] }
 0x4a7   : > { %v1294_v52 = vmax.f32 %v1292_v49, 0.0  ;;  %v7423_v49 = vpack.c.bf16 %v5708_v48, %v5707_v46 }
 0x4a9   : > { %6585 = vmatprep.mubr.msk.f32.mxu1 %vm782_vm1, %v1294_v52 }
 0x4aa   : > { %6586 = vmatmul.mubr.msk.f32.vlgmr.msra.gmra.mrb[10].mxu1 %vm782_vm1, %v1295_v53 }
 0x4ab   : > { %7354 = vmatpush3.bf16.msra.mxu1 %v7351_v44  ;;  %6604 = vmatprep.mubr.msk.f32.mxu1 %vm782_vm1, %v1294_v52  ;;  %v5696_v44 = vld [vmem:[%s8975_s1 + $0x4b0] sm:$0xff] }
 0x4ac   : > { %7356 = vmatprep.subr.bf16.mxu1 %v7355_v54  ;;  %v7407_v47 = vpack.c.bf16 %v5697_v45, %v5696_v44  ;;  %v5779_v45 = vld [vmem:[%s8975_s1 + $0x818] sm:$0xff] }
 0x4af   : > { %7358 = vmatpush3.bf16.msra.mxu1 %v7355_v54 }
 0x4b0   : > { %7360 = vmatprep.subr.bf16.mxu1 %v7359_v57 }
 0x4b3   : > { %7362 = vmatpush3.bf16.msra.mxu1 %v7359_v57 }
 0x4b4   : > { %7364 = vmatprep.subr.bf16.mxu1 %v7363_v60 }
 0x4b7   : > { %7366 = vmatpush3.bf16.msra.mxu1 %v7363_v60 }
 0x4b8   : > { %7396 = vmatprep.subr.bf16.mxu1 %v7395_v24 }
 0x4ba   : > { %6605 = vmatmul.mubr.msk.f32.vlgmr.msra.gmra.mrb[12].mxu1 %vm782_vm1, %v1295_v53 }
 0x4bb   : > { %7398 = vmatpush3.bf16.msra.mxu1 %v7395_v24  ;;  %v5744_v24 = vld [vmem:[%s8975_s1 + $0x6a8] sm:$0xff] }
 0x4bc   : > { %7400 = vmatprep.subr.bf16.mxu1 %v7399_v27  ;;  %v7476_v25 = vpack.c.bf16 %v5744_v24, %v5743_v23 }
 0x4bf   : > { %7402 = vmatpush3.bf16.msra.mxu1 %v7399_v27  ;;  %v5746_v27 = vld [vmem:[%s8975_s1 + $0x6b8] sm:$0xff] }
 0x4c0   : > { %7404 = vmatprep.subr.bf16.mxu1 %v7403_v41  ;;  %v7480_v28 = vpack.c.bf16 %v5746_v27, %v5745_v26 }
 0x4c3   : > { %7406 = vmatpush3.bf16.msra.mxu1 %v7403_v41  ;;  %v5776_v41 = vld [vmem:[%s8975_s1 + $0x800] sm:$0xff] }
 0x4c4   : > { %7408 = vmatprep.subr.bf16.mxu1 %v7407_v47  ;;  %v7522_v44 = vpack.c.bf16 %v5777_v42, %v5776_v41  ;;  %v5784_v42 = vld [vmem:[%s8976_s2 + $0x100] sm:$0xff] }
 0x4c7   : > { %7410 = vmatpush3.bf16.msra.mxu1 %v7407_v47 }
 0x4c8   : > { %7427 = vmatprep.subr.bf16.mxu1 %v7714_v59 }
 0x57d   : > { %v6587_v62 = vpop.f32.mrb[10].mxu1 }
 0x57e   : > { %v1380_v63 = vpop.f32.mrb[11].mxu1 }
 0x57f   : > { %v7371_v0 = vpack.c.bf16 %v6587_v62, %v1380_v63 }
 0x58d   : > { %v6606_v3 = vpop.f32.mrb[12].mxu1 }
 0x58e   : > { %v1467_v4 = vpop.f32.mrb[13].mxu1 }
 0x58f   : > { %v7367_v5 = vpack.c.bf16 %v6606_v3, %v1467_v4  ;;  %v5714_v3 = vld [vmem:[%s8975_s1 + $0x580] sm:$0xff]  ;;  %v5715_v4 = vld [vmem:[%s8975_s1 + $0x588] sm:$0xff] }
 0x590   : > { %v7433_v6 = vpack.c.bf16 %v5715_v4, %v5714_v3  ;;  %v5733_v3 = vld [vmem:[%s8975_s1 + $0x628] sm:$0xff] }
 0x591   : > { %7368 = vmatprep.subr.bf16.mxu0 %v7367_v5 }
 0x592   : > { %7370 = vmatpush3.bf16.msra.mxu0 %v7367_v5  ;;  %v5709_v5 = vld [vmem:[%s8976_s2 + $0xa0] sm:$0xff] }
 0x593   : > { %7372 = vmatprep.subr.bf16.mxu0 %v7371_v0 }
 0x595   : > { %6612 = vmatmul.mubr.msk.f32.vlgmr.msra.gmra.mrb[12].mxu0 %vm951_vm2, %v5667_v8  ;;  %v5717_v8 = vld [vmem:[%s8975_s1 + $0x598] sm:$0xff] }
 0x596   : > { %7374 = vmatpush3.bf16.msra.mxu0 %v7371_v0  ;;  %6618 = vmatprep.mubr.msk.f32.mxu0 %vm951_vm2, %v5654_v9  ;;  %v5698_v9 = vld [vmem:[%s8976_s2 + $0x90] sm:$0xff] }
 0x597   : > { %7376 = vmatprep.subr.bf16.mxu0 %v7375_v10 }
 0x59d   : > { %6619 = vmatmul.mubr.msk.f32.vlgmr.msra.gmra.mrb[12].mxu0 %vm951_vm2, %v5655_v13  ;;  %v7441_v13 = vpack.c.bf16 %v5719_v12, %v5718_v11 }
 0x59e   : > { %7378 = vmatpush3.bf16.msra.mxu0 %v7375_v10  ;;  %6637 = vmatprep.mubr.msk.f32.mxu0 %vm782_vm1, %v1294_v52  ;;  %v7437_v10 = vpack.c.bf16 %v5717_v8, %v5716_v7 }
 0x59f   : > { %7380 = vmatprep.subr.bf16.mxu0 %v7379_v14 }
 0x5a2   : > { %7382 = vmatpush3.bf16.msra.mxu0 %v7379_v14  ;;  %v5720_v14 = vld [vmem:[%s8975_s1 + $0x5b0] sm:$0xff] }
 0x5a3   : > { %7384 = vmatprep.subr.bf16.mxu0 %v7383_v17  ;;  %v7445_v16 = vpack.c.bf16 %v5721_v15, %v5720_v14  ;;  %v5781_v14 = vld [vmem:[%s8975_s1 + $0x828] sm:$0xff] }
 0x5a6   : > { %7386 = vmatpush3.bf16.msra.mxu0 %v7383_v17  ;;  %v5739_v17 = vld [vmem:[%s8975_s1 + $0x680] sm:$0xff] }
 0x5a7   : > { %7388 = vmatprep.subr.bf16.mxu0 %v7387_v20  ;;  %v7468_v19 = vpack.c.bf16 %v5740_v18, %v5739_v17  ;;  %v5747_v18 = vld [vmem:[%s8976_s2 + $0xd0] sm:$0xff] }
 0x5aa   : > { %7390 = vmatpush3.bf16.msra.mxu0 %v7387_v20  ;;  %v5741_v20 = vld [vmem:[%s8975_s1 + $0x690] sm:$0xff] }
 0x5ad   : > { %6638 = vmatmul.mubr.msk.f32.vlgmr.msra.gmra.mrb[14].mxu0 %vm782_vm1, %v1295_v53 }
 0x5ae   : > { %6644 = vmatprep.mubr.msk.f32.mxu0 %vm951_vm2, %v5682_v21  ;;  %v5742_v21 = vld [vmem:[%s8975_s1 + $0x698] sm:$0xff] }
 0x5af   : > { %v7472_v22 = vpack.c.bf16 %v5742_v21, %v5741_v20  ;;  %v5727_v20 = vld [vmem:[%s8977_s3 + $0x3] ss:$0 sm:$0xff] }
 0x680   : > { %v6639_v30 = vpop.f32.mrb[14].mxu0 }
 0x681   : > { %v1716_v31 = vpop.f32.mrb[15].mxu0 }
 0x682   : > { %v7391_v32 = vpack.c.bf16 %v6639_v30, %v1716_v31  ;;  %v5753_v30 = vld [vmem:[%s8975_s1 + $0x708] sm:$0xff] }
 0x683   : > { %v7490_v31 = vpack.c.bf16 %v5753_v30, %v5752_v29  ;;  %v5766_v29 = vld [vmem:[%s8975_s1 + $0x780] sm:$0xff]  ;;  %v5767_v30 = vld [vmem:[%s8975_s1 + $0x788] sm:$0xff] }
 0x684   : > { %7392 = vmatprep.subr.bf16.mxu0 %v7391_v32 }
 0x685   : > { %7394 = vmatpush3.bf16.msra.mxu0 %v7391_v32  ;;  %v5754_v32 = vld [vmem:[%s8975_s1 + $0x710] sm:$0xff] }
 0x686   : > { %7412 = vmatprep.subr.bf16.mxu0 %v7411_v33 }
 0x688   : > { %6645 = vmatmul.mubr.msk.f32.vlgmr.msra.gmra.mrb[12].mxu0 %vm951_vm2, %v5683_v36  ;;  %v5757_v36 = vld [vmem:[%s8975_s1 + $0x728] sm:$0xff] }
 0x689   : > { %7414 = vmatpush3.bf16.msra.mxu0 %v7411_v33  ;;  %v5755_v33 = vld [vmem:[%s8975_s1 + $0x718] sm:$0xff] }
 0x68a   : > { %7416 = vmatprep.subr.bf16.mxu0 %v7415_v37  ;;  %v7494_v34 = vpack.c.bf16 %v5755_v33, %v5754_v32  ;;  %v7510_v32 = vpack.c.bf16 %v5767_v30, %v5766_v29  ;;  %v5768_v33 = vld [vmem:[%s8975_s1 + $0x790] sm:$0xff]  ;;  %v5818_v30 = vld [vmem:[%s8975_s1 + $0x9b8] sm:$0xff] }
 0x68b   : > { %v5817_v29 = vld [vmem:[%s8975_s1 + $0x9b0] sm:$0xff] }
 0x68d   : > { %7418 = vmatpush3.bf16.msra.mxu0 %v7415_v37  ;;  %v7498_v37 = vpack.c.bf16 %v5757_v36, %v5756_v35  ;;  %v5770_v36 = vld [vmem:[%s8975_s1 + $0x7a0] sm:$0xff] }
 0x68e   : > { %7420 = vmatprep.subr.bf16.mxu0 %v7419_v43 }
 0x691   : > { %7422 = vmatpush3.bf16.msra.mxu0 %v7419_v43  ;;  %v5778_v43 = vld [vmem:[%s8975_s1 + $0x810] sm:$0xff] }
 0x692   : > { %7424 = vmatprep.subr.bf16.mxu0 %v7423_v49  ;;  %v7525_v46 = vpack.c.bf16 %v5779_v45, %v5778_v43  ;;  %v5788_v45 = vld [vmem:[%s8975_s1 + $0x880] sm:$0xff] }
 0x695   : > { %7426 = vmatpush3.bf16.msra.mxu0 %v7423_v49 }
 0x696   : > { %7449 = vmatprep.subr.bf16.mxu0 %v7714_v59 }
 0x75b   : > { %v6646_v51 = vpop.f32.mrb[12].mxu0 }
 0x75c   : > { %v1817_v52 = vadd.f32 %v6646_v51, %v5689_v50  ;;  %v1797_v53 = vpop.f32.mrb[13].mxu0 }
 0x75d   : > { %v1816_v54 = vadd.f32 %v5689_v50, %v1797_v53  ;;  %v5729_v53 = vld [vmem:[%s8975_s1 + $0x608] sm:$0xff] }
 0x75e   : > { %v1819_v55 = vadd.f32 %v1817_v52, %v7988_v2  ;;  %v5728_v52 = vld [vmem:[%s8975_s1 + $0x600] sm:$0xff] }
 0x75f   : > { %v1818_v56 = vadd.f32 %v1816_v54, %v7986_v1  ;;  %v7716_v1 = vmov 0.0  }
 0x760   : > { %v8210_v58 = vmax.f32 %v1819_v55, 0.0 }
 0x761   : > { %v8208_v57 = vmax.f32 %v1818_v56, 0.0  ;;  %v7452_v56 = vpack.c.bf16 %v5729_v53, %v5728_v52 }
 0x763   : > { %6663 = vmatprep.mubr.msk.f32.mxu1 %vm782_vm1, %v8208_v57  ;;  %6682 = vmatprep.mubr.msk.f32.mxu0 %vm782_vm1, %v8208_v57 }
 0x764   : > { %6664 = vmatmul.mubr.msk.f32.vlgmr.msra.gmra.mrb[14].mxu1 %vm782_vm1, %v8210_v58  ;;  %6683 = vmatmul.mubr.msk.f32.vlgmr.msra.gmra.mrb[16].mxu0 %vm782_vm1, %v8210_v58 }
 0x765   : > { %6689 = vmatprep.mubr.msk.f32.mxu1 %vm7715_vm3, %v7716_v1  ;;  %6722 = vmatprep.mubr.msk.f32.mxu0 %vm7715_vm3, %v7716_v1 }
 0x837   : > { %v6665_v2 = vpop.f32.mrb[14].mxu1  ;;  %v6684_v60 = vpop.f32.mrb[16].mxu0 }
 0x838   : > { %v1905_v61 = vpop.f32.mrb[15].mxu1  ;;  %v1991_v62 = vpop.f32.mrb[17].mxu0 }
 0x839   : > { %v7431_v63 = vpack.c.bf16 %v6665_v2, %v1905_v61  ;;  %v7428_v0 = vpack.c.bf16 %v6684_v60, %v1991_v62  ;;  %v5730_v60 = vld [vmem:[%s8975_s1 + $0x610] sm:$0xff]  ;;  %v5731_v61 = vld [vmem:[%s8975_s1 + $0x618] sm:$0xff] }
 0x83a   : > { %v5722_v62 = vld [vmem:[%s8976_s2 + $0xb0] sm:$0xff] }
 0x83b   : > { %7429 = vmatpush3.bf16.msra.mxu1 %v7428_v0  ;;  %v5732_v0 = vld [vmem:[%s8975_s1 + $0x620] sm:$0xff] }
 0x83c   : > { %7430 = vmatprep.subr.bf16.mxu1 %v7714_v59  ;;  %v7460_v4 = vpack.c.bf16 %v5733_v3, %v5732_v0  ;;  %v5803_v0 = vld [vmem:[%s8975_s1 + $0x910] sm:$0xff] }
 0x83e   : > { %6690 = vmatmul.mubr.msk.f32.vlgmr.msra.gmra.mrb[16].mxu1 %vm951_vm2, %v5709_v5  ;;  %v5734_v5 = vld [vmem:[%s8975_s1 + $0x630] sm:$0xff] }
 0x83f   : > { %7432 = vmatpush3.bf16.msra.mxu1 %v7431_v63  ;;  %6696 = vmatprep.mubr.msk.f32.mxu1 %vm7715_vm3, %v7716_v1  ;;  %v7456_v63 = vpack.c.bf16 %v5731_v61, %v5730_v60  ;;  %v5795_v60 = vld [vmem:[%s8975_s1 + $0x8b8] sm:$0xff] }
 0x840   : > { %7434 = vmatprep.subr.bf16.mxu1 %v7433_v6 }
 0x842   : > { %6697 = vmatmul.mubr.msk.f32.vlgmr.msra.gmra.mrb[18].mxu1 %vm951_vm2, %v5698_v9 }
 0x843   : > { %7436 = vmatpush3.bf16.msra.mxu1 %v7433_v6  ;;  %6715 = vmatprep.mubr.msk.f32.mxu1 %vm782_vm1, %v8208_v57  ;;  %v5735_v6 = vld [vmem:[%s8975_s1 + $0x638] sm:$0xff] }
 0x844   : > { %7438 = vmatprep.subr.bf16.mxu1 %v7437_v10  ;;  %v7464_v7 = vpack.c.bf16 %v5735_v6, %v5734_v5  ;;  %v5805_v6 = vld [vmem:[%s8975_s1 + $0x920] sm:$0xff] }
 0x847   : > { %7440 = vmatpush3.bf16.msra.mxu1 %v7437_v10 }
 0x848   : > { %7442 = vmatprep.subr.bf16.mxu1 %v7441_v13 }
 0x84b   : > { %7444 = vmatpush3.bf16.msra.mxu1 %v7441_v13  ;;  %v5780_v13 = vld [vmem:[%s8975_s1 + $0x820] sm:$0xff] }
 0x84c   : > { %7446 = vmatprep.subr.bf16.mxu1 %v7445_v16  ;;  %v7528_v15 = vpack.c.bf16 %v5781_v14, %v5780_v13  ;;  %v5765_v14 = vld [vmem:[%s8977_s3 + $0x4] ss:$0 sm:$0xff] }
 0x84f   : > { %7448 = vmatpush3.bf16.msra.mxu1 %v7445_v16  ;;  %v5783_v16 = vld [vmem:[%s8975_s1 + $0x838] sm:$0xff] }
 0x850   : > { %7469 = vmatprep.subr.bf16.mxu1 %v7468_v19 }
 0x852   : > { %6716 = vmatmul.mubr.msk.f32.vlgmr.msra.gmra.mrb[20].mxu1 %vm782_vm1, %v8210_v58 }
 0x853   : > { %7471 = vmatpush3.bf16.msra.mxu1 %v7468_v19  ;;  %6760 = vmatprep.mubr.msk.f32.mxu1 %vm782_vm1, %v8208_v57 }
 0x854   : > { %7473 = vmatprep.subr.bf16.mxu1 %v7472_v22 }
 0x857   : > { %7475 = vmatpush3.bf16.msra.mxu1 %v7472_v22 }
 0x858   : > { %7477 = vmatprep.subr.bf16.mxu1 %v7476_v25 }
 0x85b   : > { %7479 = vmatpush3.bf16.msra.mxu1 %v7476_v25 }
 0x85c   : > { %7481 = vmatprep.subr.bf16.mxu1 %v7480_v28 }
 0x85f   : > { %7483 = vmatpush3.bf16.msra.mxu1 %v7480_v28  ;;  %v5736_v28 = vld [vmem:[%s8976_s2 + $0xc0] sm:$0xff] }
 0x860   : > { %7491 = vmatprep.subr.bf16.mxu1 %v7490_v31 }
 0x862   : > { %6761 = vmatmul.mubr.msk.f32.vlgmr.msra.gmra.mrb[22].mxu1 %vm782_vm1, %v8210_v58 }
 0x863   : > { %7493 = vmatpush3.bf16.msra.mxu1 %v7490_v31  ;;  %6793 = vmatprep.mubr.msk.f32.mxu1 %vm782_vm1, %v8208_v57  ;;  %v5760_v31 = vld [vmem:[%s8976_s2 + $0xe0] sm:$0xff] }
 0x864   : > { %7495 = vmatprep.subr.bf16.mxu1 %v7494_v34 }
 0x867   : > { %7497 = vmatpush3.bf16.msra.mxu1 %v7494_v34  ;;  %v5769_v34 = vld [vmem:[%s8975_s1 + $0x798] sm:$0xff] }
 0x868   : > { %7499 = vmatprep.subr.bf16.mxu1 %v7498_v37  ;;  %v7513_v35 = vpack.c.bf16 %v5769_v34, %v5768_v33  ;;  %v5819_v34 = vld [vmem:[%s8976_s2 + $0x130] sm:$0xff] }
 0x86b   : > { %7501 = vmatpush3.bf16.msra.mxu1 %v7498_v37  ;;  %v5771_v37 = vld [vmem:[%s8975_s1 + $0x7a8] sm:$0xff] }
 0x86c   : > { %7503 = vmatprep.subr.bf16.mxu1 %v7502_v40  ;;  %v7516_v38 = vpack.c.bf16 %v5771_v37, %v5770_v36  ;;  %v5823_v36 = vld [vmem:[%s8975_s1 + $0xa00] sm:$0xff]  ;;  %v5824_v37 = vld [vmem:[%s8975_s1 + $0xa08] sm:$0xff] }
 0x86f   : > { %7505 = vmatpush3.bf16.msra.mxu1 %v7502_v40  ;;  %v5773_v40 = vld [vmem:[%s8975_s1 + $0x7b8] sm:$0xff] }
 0x870   : > { %7521 = vmatprep.subr.bf16.mxu1 %v7714_v59  ;;  %v7519_v41 = vpack.c.bf16 %v5773_v40, %v5772_v39  ;;  %v5809_v39 = vld [vmem:[%s8976_s2 + $0x120] sm:$0xff]  ;;  %v7570_v40 = vpack.c.bf16 %v5824_v37, %v5823_v36  ;;  %v5864_v36 = vld [vmem:[%s8975_s1 + $0xbb0] sm:$0xff]  ;;  %v5865_v37 = vld [vmem:[%s8975_s1 + $0xbb8] sm:$0xff] }
 0x872   : > { %6794 = vmatmul.mubr.msk.f32.vlgmr.msra.gmra.mrb[24].mxu1 %vm782_vm1, %v8210_v58 }
 0x873   : > { %6838 = vmatprep.mubr.msk.f32.mxu1 %vm7715_vm3, %v7716_v1  ;;  %7523 = vmatpush3.bf16.msra.mxu1 %v7522_v44 }
 0x874   : > { %7524 = vmatprep.subr.bf16.mxu1 %v7714_v59 }
 0x877   : > { %7526 = vmatpush3.bf16.msra.mxu1 %v7525_v46  ;;  %v5789_v46 = vld [vmem:[%s8975_s1 + $0x888] sm:$0xff] }
 0x878   : > { %7527 = vmatprep.subr.bf16.mxu1 %v7714_v59 }
 0x87b   : > { %7529 = vmatpush3.bf16.msra.mxu1 %v7528_v15 }
 0x87c   : > { %7530 = vmatprep.subr.bf16.mxu1 %v7714_v59 }
 0x911   : > { %v2069_v47 = vpop.f32.mrb[16].mxu1 }
 0x912   : > { %v6691_v48 = vpop.f32.mrb[17].mxu1 }
 0x913   : > { %v7534_v48 = vpack.c.bf16 %v5789_v46, %v5788_v45  ;;  %v5828_v45 = vld [vmem:[%s8975_s1 + $0xa28] sm:$0xff] }
 0x915   : > { %v2142_v49 = vpop.f32.mrb[18].mxu1 }
 0x916   : > { %v2143_v50 = vadd.f32 %v2142_v49, %v2069_v47  ;;  %v6698_v51 = vpop.f32.mrb[19].mxu1  ;;  %v5774_v47 = vld [vmem:[%s8976_s2 + $0xf0] sm:$0xff] }
 0x917   : > { %v5791_v51 = vld [vmem:[%s8975_s1 + $0x898] sm:$0xff] }
 0x925   : > { %v6717_v54 = vpop.f32.mrb[20].mxu1 }
 0x926   : > { %v2223_v55 = vpop.f32.mrb[21].mxu1 }
 0x927   : > { %v7450_v2 = vpack.c.bf16 %v6717_v54, %v2223_v55  ;;  %v5792_v54 = vld [vmem:[%s8975_s1 + $0x8a0] sm:$0xff]  ;;  %v5793_v55 = vld [vmem:[%s8975_s1 + $0x8a8] sm:$0xff] }
 0x929   : > { %7451 = vmatpush3.bf16.msra.mxu0 %v7450_v2  ;;  %v5794_v2 = vld [vmem:[%s8975_s1 + $0x8b0] sm:$0xff] }
 0x92a   : > { %7453 = vmatprep.subr.bf16.mxu0 %v7452_v56  ;;  %v7543_v61 = vpack.c.bf16 %v5795_v60, %v5794_v2  ;;  %v5851_v2 = vld [vmem:[%s8975_s1 + $0xb28] sm:$0xff] }
 0x92c   : > { %6723 = vmatmul.mubr.msk.f32.vlgmr.msra.gmra.mrb[18].mxu0 %vm951_vm2, %v5722_v62  ;;  %v5801_v62 = vld [vmem:[%s8975_s1 + $0x900] sm:$0xff] }
 0x92d   : > { %7455 = vmatpush3.bf16.msra.mxu0 %v7452_v56  ;;  %6741 = vmatprep.mubr.msk.f32.mxu0 %vm782_vm1, %v8208_v57  ;;  %v7540_v56 = vpack.c.bf16 %v5793_v55, %v5792_v54  ;;  %v5849_v54 = vld [vmem:[%s8975_s1 + $0xb18] sm:$0xff] }
 0x92e   : > { %7457 = vmatprep.subr.bf16.mxu0 %v7456_v63 }
 0x931   : > { %7459 = vmatpush3.bf16.msra.mxu0 %v7456_v63  ;;  %v5802_v63 = vld [vmem:[%s8975_s1 + $0x908] sm:$0xff] }
 0x932   : > { %7461 = vmatprep.subr.bf16.mxu0 %v7460_v4  ;;  %v7546_v3 = vpack.c.bf16 %v5802_v63, %v5801_v62 }
 0x935   : > { %7463 = vmatpush3.bf16.msra.mxu0 %v7460_v4  ;;  %v6762_v8 = vpop.f32.mrb[22].mxu1  ;;  %v5804_v4 = vld [vmem:[%s8975_s1 + $0x918] sm:$0xff] }
 0x936   : > { %v2479_v9 = vpop.f32.mrb[23].mxu1  ;;  %7465 = vmatprep.subr.bf16.mxu0 %v7464_v7  ;;  %v7549_v5 = vpack.c.bf16 %v5804_v4, %v5803_v0  ;;  %v5836_v4 = vld [vmem:[%s8975_s1 + $0xa80] sm:$0xff] }
 0x937   : > { %v7485_v10 = vpack.c.bf16 %v6762_v8, %v2479_v9  ;;  %v5796_v9 = vld [vmem:[%s8976_s2 + $0x110] sm:$0xff] }
 0x939   : > { %7467 = vmatpush3.bf16.msra.mxu0 %v7464_v7  ;;  %v5806_v7 = vld [vmem:[%s8975_s1 + $0x928] sm:$0xff] }
 0x93a   : > { %7484 = vmatprep.subr.bf16.mxu0 %v7714_v59  ;;  %v7552_v8 = vpack.c.bf16 %v5806_v7, %v5805_v6  ;;  %v5831_v6 = vld [vmem:[%s8976_s2 + $0x140] sm:$0xff] }
 0x93c   : > { %6742 = vmatmul.mubr.msk.f32.vlgmr.msra.gmra.mrb[20].mxu0 %vm782_vm1, %v8210_v58  ;;  %v5782_v58 = vld [vmem:[%s8975_s1 + $0x830] sm:$0xff] }
 0x93d   : > { %7486 = vmatpush3.bf16.msra.mxu0 %v7485_v10  ;;  %6767 = vmatprep.mubr.msk.f32.mxu0 %vm7715_vm3, %v7716_v1  ;;  %v7531_v17 = vpack.c.bf16 %v5783_v16, %v5782_v58  ;;  %v5800_v58 = vld [vmem:[%s8977_s3 + $0x5] ss:$0 sm:$0xff] }
 0x93e   : > { %7487 = vmatprep.subr.bf16.mxu0 %v7714_v59 }
 0x93f   : > { %7532 = vmatpush3.bf16.msra.mxu1 %v7531_v17 }
 0x940   : > { %7545 = vmatprep.subr.bf16.mxu1 %v7714_v59  ;;  %6768 = vmatmul.mubr.msk.f32.vlgmr.msra.gmra.mrb[22].mxu0 %vm951_vm2, %v5747_v18  ;;  %v5811_v18 = vld [vmem:[%s8975_s1 + $0x980] sm:$0xff] }
 0x941   : > { %6774 = vmatprep.mubr.msk.f32.mxu0 %vm7715_vm3, %v7716_v1 }
 0x945   : > { %v6795_v57 = vpop.f32.mrb[24].mxu1 }
 0x946   : > { %v2711_v11 = vpop.f32.mrb[25].mxu1 }
 0x947   : > { %v7507_v12 = vpack.c.bf16 %v6795_v57, %v2711_v11  ;;  %v5807_v11 = vld [vmem:[%s8975_s1 + $0x930] sm:$0xff] }
 0x9ff   : > { %v2301_v19 = vpop.f32.mrb[18].mxu0 }
 0xa00   : > { %v2305_v21 = vadd.f32 %v2301_v19, %v2143_v50  ;;  %v6724_v22 = vpop.f32.mrb[19].mxu0  ;;  %v5790_v50 = vld [vmem:[%s8975_s1 + $0x890] sm:$0xff]  ;;  %v5812_v19 = vld [vmem:[%s8975_s1 + $0x988] sm:$0xff] }
 0xa01   : > { %v7537_v53 = vpack.c.bf16 %v5791_v51, %v5790_v50  ;;  %v5846_v50 = vld [vmem:[%s8975_s1 + $0xb00] sm:$0xff]  ;;  %v5847_v51 = vld [vmem:[%s8975_s1 + $0xb08] sm:$0xff] }
 0xa02   : > { %v2314_v23 = vadd.f32 %v5727_v20, %v2305_v21  ;;  %v7558_v21 = vpack.c.bf16 %v5812_v19, %v5811_v18  ;;  %v5843_v18 = vld [vmem:[%s8975_s1 + $0xab8] sm:$0xff] }
 0xa04   : > { %v8397_v24 = vmax.f32 %v2314_v23, 0.0  ;;  %v5813_v23 = vld [vmem:[%s8975_s1 + $0x990] sm:$0xff] }
 0xa06   : > { %6839 = vmatmul.mubr.msk.f32.vlgmr.msra.gmra.mrb[26].mxu1 %vm782_vm1, %v8397_v24 }
 0xa07   : > { %6891 = vmatprep.mubr.msk.f32.mxu1 %vm7715_vm3, %v7716_v1  ;;  %7547 = vmatpush3.bf16.msra.mxu1 %v7546_v3 }
 0xa08   : > { %7548 = vmatprep.subr.bf16.mxu1 %v7714_v59 }
 0xa0b   : > { %7550 = vmatpush3.bf16.msra.mxu1 %v7549_v5  ;;  %v5837_v5 = vld [vmem:[%s8975_s1 + $0xa88] sm:$0xff] }
 0xa0c   : > { %7551 = vmatprep.subr.bf16.mxu1 %v7714_v59  ;;  %v7582_v7 = vpack.c.bf16 %v5837_v5, %v5836_v4 }
 0xa0f   : > { %v6743_v25 = vpop.f32.mrb[20].mxu0  ;;  %7553 = vmatpush3.bf16.msra.mxu1 %v7552_v8 }
 0xa10   : > { %v2393_v26 = vpop.f32.mrb[21].mxu0  ;;  %7554 = vmatprep.subr.bf16.mxu1 %v7714_v59 }
 0xa11   : > { %v7488_v27 = vpack.c.bf16 %v6743_v25, %v2393_v26  ;;  %v5815_v26 = vld [vmem:[%s8975_s1 + $0x9a0] sm:$0xff] }
 0xa13   : > { %7489 = vmatpush3.bf16.msra.mxu0 %v7488_v27  ;;  %v5816_v27 = vld [vmem:[%s8975_s1 + $0x9a8] sm:$0xff] }
 0xa14   : > { %7506 = vmatprep.subr.bf16.mxu0 %v7714_v59 }
 0xa16   : > { %6775 = vmatmul.mubr.msk.f32.vlgmr.msra.gmra.mrb[22].mxu0 %vm951_vm2, %v5736_v28  ;;  %v7564_v28 = vpack.c.bf16 %v5816_v27, %v5815_v26  ;;  %v5859_v26 = vld [vmem:[%s8975_s1 + $0xb88] sm:$0xff] }
 0xa17   : > { %7508 = vmatpush3.bf16.msra.mxu0 %v7507_v12  ;;  %6800 = vmatprep.mubr.msk.f32.mxu0 %vm7715_vm3, %v7716_v1  ;;  %v5808_v12 = vld [vmem:[%s8975_s1 + $0x938] sm:$0xff] }
 0xa18   : > { %7509 = vmatprep.subr.bf16.mxu0 %v7714_v59  ;;  %v7555_v13 = vpack.c.bf16 %v5808_v12, %v5807_v11  ;;  %v5840_v12 = vld [vmem:[%s8975_s1 + $0xaa0] sm:$0xff] }
 0xa1a   : > { %7556 = vmatpush3.bf16.msra.mxu1 %v7555_v13  ;;  %v5841_v13 = vld [vmem:[%s8975_s1 + $0xaa8] sm:$0xff] }
 0xa1b   : > { %7557 = vmatprep.subr.bf16.mxu1 %v7714_v59 }
 0xa1e   : > { %6801 = vmatmul.mubr.msk.f32.vlgmr.msra.gmra.mrb[22].mxu0 %vm951_vm2, %v5760_v31  ;;  %v7567_v31 = vpack.c.bf16 %v5818_v30, %v5817_v29  ;;  %v5860_v30 = vld [vmem:[%s8975_s1 + $0xb90] sm:$0xff] }
 0xa1f   : > { %7511 = vmatpush3.bf16.msra.mxu0 %v7510_v32  ;;  %6819 = vmatprep.mubr.msk.f32.mxu0 %vm7715_vm3, %v7716_v1 }
 0xa20   : > { %7512 = vmatprep.subr.bf16.mxu0 %v7714_v59 }
 0xa23   : > { %7514 = vmatpush3.bf16.msra.mxu0 %v7513_v35 }
 0xa24   : > { %7515 = vmatprep.subr.bf16.mxu0 %v7714_v59 }
 0xa27   : > { %7517 = vmatpush3.bf16.msra.mxu0 %v7516_v38 }
 0xa28   : > { %7518 = vmatprep.subr.bf16.mxu0 %v7714_v59 }
 0xa2b   : > { %7520 = vmatpush3.bf16.msra.mxu0 %v7519_v41  ;;  %v5825_v41 = vld [vmem:[%s8975_s1 + $0xa10] sm:$0xff] }
 0xa2c   : > { %6841 = vmatprep.subr.mxu0 %v7716_v1 }
 0xa2e   : > { %6820 = vmatmul.mubr.msk.f32.vlgmr.msra.gmra.mrb[24].mxu0 %vm782_vm1, %v8397_v24 }
 0xa2f   : > { %6843 = vmatprep.mubr.msk.f32.mxu0 %vm7715_vm3, %v7716_v1 }
 0xad9   : > { %v2964_v43 = vpop.f32.mrb[26].mxu1 }
 0xada   : > { %v6840_v44 = vpop.f32.mrb[27].mxu1  ;;  %6842 = vmatpush3.msra.mxu0 %v2964_v43 }
 0xadb   : > { %6844 = vmatmul.mubr.msk.f32.vlgmr.msra.gmra.mrb[22].mxu0 %vm2968_vm4, %v5784_v42  ;;  %6846 = vmatprep.subr.mxu0 %v7716_v1  ;;  %v5826_v42 = vld [vmem:[%s8975_s1 + $0xa18] sm:$0xff]  ;;  %v5827_v44 = vld [vmem:[%s8975_s1 + $0xa20] sm:$0xff] }
 0xadc   : > { %6848 = vmatprep.mubr.msk.f32.mxu0 %vm7715_vm3, %v7716_v1  ;;  %v7573_v43 = vpack.c.bf16 %v5826_v42, %v5825_v41  ;;  %v7576_v46 = vpack.c.bf16 %v5828_v45, %v5827_v44  ;;  %v5844_v44 = vld [vmem:[%s8976_s2 + $0x150] sm:$0xff] }
 0xadd   : > { %v5866_v45 = vld [vmem:[%s8976_s2 + $0x170] sm:$0xff] }
 0xb01   : > { %v2883_v49 = vpop.f32.mrb[24].mxu0 }
 0xb02   : > { %v6821_v52 = vpop.f32.mrb[25].mxu0  ;;  %6847 = vmatpush3.msra.mxu0 %v2883_v49 }
 0xb03   : > { %7533 = vmatprep.subr.bf16.mxu0 %v7714_v59  ;;  %6849 = vmatmul.mubr.msk.f32.vlgmr.msra.gmra.mrb[22].mxu0 %vm2968_vm4, %v5774_v47  ;;  %v5829_v47 = vld [vmem:[%s8975_s1 + $0xa30] sm:$0xff]  ;;  %v7594_v52 = vpack.c.bf16 %v5847_v51, %v5846_v50 }
 0xb04   : > { %7535 = vmatpush3.bf16.msra.mxu0 %v7534_v48  ;;  %6867 = vmatprep.mubr.msk.f32.mxu0 %vm7715_vm3, %v7716_v1  ;;  %v5830_v48 = vld [vmem:[%s8975_s1 + $0xa38] sm:$0xff]  ;;  %v5873_v51 = vld [vmem:[%s8975_s1 + $0xf10] sm:$0xff] }
 0xb05   : > { %7536 = vmatprep.subr.bf16.mxu0 %v7714_v59  ;;  %v7579_v49 = vpack.c.bf16 %v5830_v48, %v5829_v47  ;;  %v5871_v48 = vld [vmem:[%s8975_s1 + $0xf00] sm:$0xff] }
 0xb08   : > { %7538 = vmatpush3.bf16.msra.mxu0 %v7537_v53  ;;  %v5848_v53 = vld [vmem:[%s8975_s1 + $0xb10] sm:$0xff] }
 0xb09   : > { %7539 = vmatprep.subr.bf16.mxu0 %v7714_v59  ;;  %v7597_v55 = vpack.c.bf16 %v5849_v54, %v5848_v53  ;;  %v5875_v54 = vld [vmem:[%s8975_s1 + $0xf20] sm:$0xff] }
 0xb0c   : > { %7541 = vmatpush3.bf16.msra.mxu0 %v7540_v56  ;;  %v5850_v56 = vld [vmem:[%s8975_s1 + $0xb20] sm:$0xff] }
 0xb0d   : > { %7542 = vmatprep.subr.bf16.mxu0 %v7714_v59  ;;  %v7600_v60 = vpack.c.bf16 %v5851_v2, %v5850_v56  ;;  %v5877_v2 = vld [vmem:[%s8975_s1 + $0xf30] sm:$0xff] }
 0xb10   : > { %7544 = vmatpush3.bf16.msra.mxu0 %v7543_v61 }
 0xb11   : > { %6870 = vmatprep.subr.mxu0 %v7716_v1 }
 0xb13   : > { %6868 = vmatmul.mubr.msk.f32.vlgmr.msra.gmra.mrb[26].mxu0 %vm782_vm1, %v8397_v24  ;;  %v5814_v24 = vld [vmem:[%s8975_s1 + $0x998] sm:$0xff] }
 0xb14   : > { %6872 = vmatprep.mubr.msk.f32.mxu0 %vm7715_vm3, %v7716_v1  ;;  %v7561_v25 = vpack.c.bf16 %v5814_v24, %v5813_v23 }
 0xbe6   : > { %v3192_v10 = vpop.f32.mrb[26].mxu0 }
 0xbe7   : > { %v6869_v57 = vpop.f32.mrb[27].mxu0  ;;  %6871 = vmatpush3.msra.mxu0 %v3192_v10  ;;  %v5839_v10 = vld [vmem:[%s8975_s1 + $0xa98] sm:$0xff] }
 0xbe8   : > { %6873 = vmatmul.mubr.msk.f32.vlgmr.msra.gmra.mrb[22].mxu0 %vm2968_vm4, %v5796_v9  ;;  %6913 = vmatprep.subr.mxu0 %v7716_v1  ;;  %v5838_v9 = vld [vmem:[%s8975_s1 + $0xa90] sm:$0xff] }
 0xbe9   : > { %6915 = vmatprep.mubr.msk.f32.mxu0 %vm7715_vm3, %v7716_v1  ;;  %v7585_v11 = vpack.c.bf16 %v5839_v10, %v5838_v9 }
 0xcbb   : > { %v3265_v15 = vpop.f32.mrb[22].mxu0 }
 0xcbc   : > { %v7671_v16 = vadd.f32 %v5765_v14, %v3265_v15  ;;  %v6874_v17 = vpop.f32.mrb[23].mxu0  ;;  %v7588_v14 = vpack.c.bf16 %v5841_v13, %v5840_v12  ;;  %v5852_v15 = vld [vmem:[%s8975_s1 + $0xb30] sm:$0xff]  ;;  %v5889_v12 = vld [vmem:[%s8975_s1 + $0xc88] sm:$0xff] }
 0xcbd   : > { %v5842_v17 = vld [vmem:[%s8975_s1 + $0xab0] sm:$0xff] }
 0xcbe   : > { %v7672_v20 = vadd.f32 %v7671_v16, %v5800_v58  ;;  %v5853_v58 = vld [vmem:[%s8975_s1 + $0xb38] sm:$0xff]  ;;  %v7591_v19 = vpack.c.bf16 %v5843_v18, %v5842_v17  ;;  %v5879_v17 = vld [vmem:[%s8976_s2 + $0x1e0] sm:$0xf] }
 0xcbf   : > { %v7603_v16 = vpack.c.bf16 %v5853_v58, %v5852_v15  ;;  %v5882_v58 = vld [vmem:[%s8975_s1 + $0xc00] sm:$0xff] }
 0xcc0   : > { %v8542_v22 = vmax.f32 %v7672_v20, 0.0 }
 0xcc2   : > { %6892 = vmatmul.mubr.msk.f32.vlgmr.msra.gmra.mrb[28].mxu1 %vm782_vm1, %v8542_v22 }
 0xcc3   : > { %7559 = vmatpush3.bf16.msra.mxu1 %v7558_v21  ;;  %6910 = vmatprep.mubr.msk.f32.mxu1 %vm7715_vm3, %v7716_v1  ;;  %v5835_v21 = vld [vmem:[%s8977_s3 + $0x6] ss:$0 sm:$0xff] }
 0xcc4   : > { %7560 = vmatprep.subr.bf16.mxu1 %v7714_v59 }
 0xcc7   : > { %7562 = vmatpush3.bf16.msra.mxu1 %v7561_v25  ;;  %v5858_v25 = vld [vmem:[%s8975_s1 + $0xb80] sm:$0xff] }
 0xcc8   : > { %7563 = vmatprep.subr.bf16.mxu1 %v7714_v59 }
 0xccb   : > { %7565 = vmatpush3.bf16.msra.mxu1 %v7564_v28  ;;  %v7606_v28 = vpack.c.bf16 %v5859_v26, %v5858_v25 }
 0xccc   : > { %7566 = vmatprep.subr.bf16.mxu1 %v7714_v59 }
 0xccf   : > { %7568 = vmatpush3.bf16.msra.mxu1 %v7567_v31  ;;  %v5861_v31 = vld [vmem:[%s8975_s1 + $0xb98] sm:$0xff] }
 0xcd0   : > { %6942 = vmatprep.subr.mxu1 %v7716_v1 }
 0xcd2   : > { %6911 = vmatmul.mubr.msk.f32.vlgmr.msra.gmra.mrb[30].mxu1 %vm782_vm1, %v8542_v22 }
 0xcd3   : > { %6944 = vmatprep.mubr.msk.f32.mxu1 %vm7715_vm3, %v7716_v1 }
 0xd95   : > { %v3361_v32 = vpop.f32.mrb[28].mxu1 }
 0xd96   : > { %v6893_v33 = vpop.f32.mrb[29].mxu1 }
 0xd97   : > { %v5862_v33 = vld [vmem:[%s8975_s1 + $0xba0] sm:$0xff] }
 0xda5   : > { %v3442_v35 = vpop.f32.mrb[30].mxu1 }
 0xda6   : > { %v6912_v38 = vpop.f32.mrb[31].mxu1  ;;  %6914 = vmatpush3.msra.mxu0 %v3442_v35 }
 0xda7   : > { %6916 = vmatmul.mubr.msk.f32.vlgmr.msra.gmra.mrb[28].mxu0 %vm2968_vm4, %v5819_v34  ;;  %6918 = vmatprep.subr.mxu0 %v7716_v1  ;;  %v5863_v34 = vld [vmem:[%s8975_s1 + $0xba8] sm:$0xff]  ;;  %v7615_v38 = vpack.c.bf16 %v5865_v37, %v5864_v36 }
 0xda8   : > { %6919 = vmatpush3.msra.mxu0 %v3361_v32  ;;  %6920 = vmatprep.mubr.msk.f32.mxu0 %vm7715_vm3, %v7716_v1  ;;  %v7609_v32 = vpack.c.bf16 %v5861_v31, %v5860_v30  ;;  %v7612_v35 = vpack.c.bf16 %v5863_v34, %v5862_v33  ;;  %v5886_v33 = vld [vmem:[%s8976_s2 + $0x180] sm:$0xf]  ;;  %v5900_v34 = vld [vmem:[%s8975_s1 + $0xd10] sm:$0xff] }
 0xda9   : > { %7569 = vmatprep.subr.bf16.mxu0 %v7714_v59 }
 0xdab   : > { %6921 = vmatmul.mubr.msk.f32.vlgmr.msra.gmra.mrb[30].mxu0 %vm2968_vm4, %v5809_v39  ;;  %v5854_v39 = vld [vmem:[%s8976_s2 + $0x160] sm:$0xff] }
 0xdac   : > { %7571 = vmatpush3.bf16.msra.mxu0 %v7570_v40  ;;  %6939 = vmatprep.mubr.msk.f32.mxu0 %vm7715_vm3, %v7716_v1 }
 0xdad   : > { %7572 = vmatprep.subr.bf16.mxu0 %v7714_v59 }
 0xdb0   : > { %7574 = vmatpush3.bf16.msra.mxu0 %v7573_v43 }
 0xdb1   : > { %7575 = vmatprep.subr.bf16.mxu0 %v7714_v59 }
 0xdb4   : > { %7577 = vmatpush3.bf16.msra.mxu0 %v7576_v46 }
 0xdb5   : > { %7578 = vmatprep.subr.bf16.mxu0 %v7714_v59 }
 0xdb8   : > { %7580 = vmatpush3.bf16.msra.mxu0 %v7579_v49  ;;  %v5872_v49 = vld [vmem:[%s8975_s1 + $0xf08] sm:$0xff] }
 0xdb9   : > { %7593 = vmatprep.subr.bf16.mxu0 %v7714_v59  ;;  %v7618_v50 = vpack.c.bf16 %v5872_v49, %v5871_v48  ;;  %v5909_v48 = vld [vmem:[%s8975_s1 + $0xd88] sm:$0xff]  ;;  %v5914_v49 = vld [vmem:[%s8975_s1 + $0xe00] sm:$0xff] }
 0xdbb   : > { %6940 = vmatmul.mubr.msk.f32.vlgmr.msra.gmra.mrb[32].mxu0 %vm782_vm1, %v8542_v22 }
 0xdbc   : > { %6982 = vmatprep.mubr.msk.f32.mxu0 %vm7715_vm3, %v7716_v1  ;;  %7595 = vmatpush3.bf16.msra.mxu0 %v7594_v52  ;;  %v5874_v52 = vld [vmem:[%s8975_s1 + $0xf18] sm:$0xff] }
 0xdbd   : > { %7596 = vmatprep.subr.bf16.mxu0 %v7714_v59  ;;  %v7621_v53 = vpack.c.bf16 %v5874_v52, %v5873_v51  ;;  %v5915_v51 = vld [vmem:[%s8975_s1 + $0xe08] sm:$0xff] }
 0xdbe   : > { %v7654_v52 = vpack.c.bf16 %v5915_v51, %v5914_v49 }
 0xdc0   : > { %7598 = vmatpush3.bf16.msra.mxu0 %v7597_v55  ;;  %v5876_v55 = vld [vmem:[%s8975_s1 + $0xf28] sm:$0xff] }
 0xdc1   : > { %7599 = vmatprep.subr.bf16.mxu0 %v7714_v59  ;;  %v7624_v56 = vpack.c.bf16 %v5876_v55, %v5875_v54  ;;  %v5911_v54 = vld [vmem:[%s8975_s1 + $0xd98] sm:$0xff] }
 0xdc4   : > { %7601 = vmatpush3.bf16.msra.mxu0 %v7600_v60  ;;  %v5878_v60 = vld [vmem:[%s8975_s1 + $0xf38] sm:$0xff] }
 0xdc5   : > { %7602 = vmatprep.subr.bf16.mxu0 %v7714_v59 }
 0xdc8   : > { %7604 = vmatpush3.bf16.msra.mxu0 %v7603_v16  ;;  %v5883_v16 = vld [vmem:[%s8975_s1 + $0xc08] sm:$0xff] }
 0xdc9   : > { %7605 = vmatprep.subr.bf16.mxu0 %v7714_v59  ;;  %v7630_v18 = vpack.c.bf16 %v5883_v16, %v5882_v58 }
 0xe7a   : > { %v3515_v61 = vpop.f32.mrb[28].mxu0 }
 0xe7b   : > { %v6917_v62 = vpop.f32.mrb[29].mxu0 }
 0xe7e   : > { %v3588_v63 = vpop.f32.mrb[30].mxu0 }
 0xe7f   : > { %v3589_v0 = vadd.f32 %v3588_v63, %v3515_v61  ;;  %v6922_v3 = vpop.f32.mrb[31].mxu0  ;;  %v7627_v61 = vpack.c.bf16 %v5878_v60, %v5877_v2  ;;  %v5917_v2 = vld [vmem:[%s8975_s1 + $0xe18] sm:$0xff] }
 0xe8e   : > { %v3669_v8 = vpop.f32.mrb[32].mxu0 }
 0xe8f   : > { %v6941_v57 = vpop.f32.mrb[33].mxu0  ;;  %6943 = vmatpush3.msra.mxu1 %v3669_v8 }
 0xe90   : > { %6945 = vmatmul.mubr.msk.f32.vlgmr.msra.gmra.mrb[32].mxu1 %vm2968_vm4, %v5831_v6  ;;  %7581 = vmatprep.subr.bf16.mxu1 %v7714_v59  ;;  %v5870_v6 = vld [vmem:[%s8977_s3 + $0x7] ss:$0 sm:$0xff] }
 0xe91   : > { %7583 = vmatpush3.bf16.msra.mxu1 %v7582_v7  ;;  %6963 = vmatprep.mubr.msk.f32.mxu1 %vm7715_vm3, %v7716_v1 }
 0xe92   : > { %7584 = vmatprep.subr.bf16.mxu1 %v7714_v59 }
 0xe95   : > { %7586 = vmatpush3.bf16.msra.mxu1 %v7585_v11  ;;  %v5888_v11 = vld [vmem:[%s8975_s1 + $0xc80] sm:$0xff] }
 0xe96   : > { %7587 = vmatprep.subr.bf16.mxu1 %v7714_v59  ;;  %v7636_v13 = vpack.c.bf16 %v5889_v12, %v5888_v11  ;;  %v5926_v11 = vld [vmem:[%s8975_s1 + $0xe90] sm:$0xff]  ;;  %v5927_v12 = vld [vmem:[%s8975_s1 + $0xe98] sm:$0xff] }
 0xe99   : > { %7589 = vmatpush3.bf16.msra.mxu1 %v7588_v14  ;;  %v5890_v14 = vld [vmem:[%s8975_s1 + $0xc90] sm:$0xff] }
 0xe9a   : > { %7590 = vmatprep.subr.bf16.mxu1 %v7714_v59 }
 0xe9d   : > { %7592 = vmatpush3.bf16.msra.mxu1 %v7591_v19 }
 0xe9e   : > { %6985 = vmatprep.subr.mxu1 %v7716_v1 }
 0xf63   : > { %v3742_v20 = vpop.f32.mrb[32].mxu1 }
 0xf64   : > { %v3746_v23 = vadd.f32 %v3742_v20, %v3589_v0  ;;  %v6946_v24 = vpop.f32.mrb[33].mxu1 }
 0xf66   : > { %v3755_v27 = vadd.f32 %v5835_v21, %v3746_v23  ;;  %v5884_v21 = vld [vmem:[%s8975_s1 + $0xc10] sm:$0xff]  ;;  %v5885_v23 = vld [vmem:[%s8975_s1 + $0xc18] sm:$0xff] }
 0xf67   : > { %v7633_v24 = vpack.c.bf16 %v5885_v23, %v5884_v21  ;;  %v5934_v23 = vld [vmem:[%s8975_s1 + $0xf80] sm:$0xff] }
 0xf68   : > { %v3756_v29 = vmax.f32 %v3755_v27, 0.0  ;;  %v5898_v27 = vld [vmem:[%s8975_s1 + $0xd00] sm:$0xff] }
 0xf6a   : > { %6964 = vmatmul.mubr.msk.f32.vlgmr.msra.gmra.mrb[34].mxu1 %vm782_vm1, %v3756_v29  ;;  %6983 = vmatmul.mubr.msk.f32.vlgmr.msra.gmra.mrb[34].mxu0 %vm782_vm1, %v3756_v29 }
 0xf6b   : > { %7607 = vmatpush3.bf16.msra.mxu0 %v7606_v28  ;;  %7011 = vmatprep.mubr.msk.f32.mxu0 %vm7715_vm3, %v7716_v1  ;;  %v5899_v28 = vld [vmem:[%s8975_s1 + $0xd08] sm:$0xff] }
 0xf6c   : > { %7608 = vmatprep.subr.bf16.mxu0 %v7714_v59  ;;  %6987 = vmatprep.mubr.msk.f32.mxu1 %vm7715_vm3, %v7716_v1  ;;  %v7642_v30 = vpack.c.bf16 %v5899_v28, %v5898_v27  ;;  %v5936_v27 = vld [vmem:[%s8975_s1 + $0xf90] sm:$0xff] }
 0xf6f   : > { %7610 = vmatpush3.bf16.msra.mxu0 %v7609_v32 }
 0xf70   : > { %7611 = vmatprep.subr.bf16.mxu0 %v7714_v59 }
 0xf73   : > { %7613 = vmatpush3.bf16.msra.mxu0 %v7612_v35  ;;  %v5901_v35 = vld [vmem:[%s8975_s1 + $0xd18] sm:$0xff] }
 0xf74   : > { %7614 = vmatprep.subr.bf16.mxu0 %v7714_v59 }
 0xf77   : > { %7616 = vmatpush3.bf16.msra.mxu0 %v7615_v38  ;;  %v7645_v38 = vpack.c.bf16 %v5901_v35, %v5900_v34  ;;  %v5938_v35 = vld [vmem:[%s8976_s2 + $0x1f0] sm:$0x3] }
 0xf78   : > { %7038 = vmatprep.subr.mxu0 %v7716_v1 }
 0xf7a   : > { %7012 = vmatmul.mubr.msk.f32.vlgmr.msra.gmra.mrb[36].mxu0 %vm782_vm1, %v3756_v29  ;;  %v5892_v29 = vld [vmem:[%s8976_s2 + $0x190] sm:$0xf] }
 0xf7b   : > { %7040 = vmatprep.mubr.msk.f32.mxu0 %vm7715_vm3, %v7716_v1 }
0x103d   : > { %v3837_v40 = vpop.f32.mrb[34].mxu1  ;;  %v3918_v41 = vpop.f32.mrb[34].mxu0 }
0x103e   : > { %v6965_v42 = vpop.f32.mrb[35].mxu1  ;;  %v6984_v43 = vpop.f32.mrb[35].mxu0  ;;  %6986 = vmatpush3.msra.mxu1 %v3918_v41 }
0x103f   : > { %6990 = vmatprep.subr.mxu1 %v7716_v1  ;;  %6988 = vmatmul.mubr.msk.f32.vlgmr.msra.gmra.mrb[36].mxu1 %vm2968_vm4, %v5854_v39 }
0x1040   : > { %6991 = vmatpush3.msra.mxu1 %v3837_v40  ;;  %6992 = vmatprep.mubr.msk.f32.mxu1 %vm7715_vm3, %v7716_v1 }
0x1041   : > { %7014 = vmatprep.subr.mxu1 %v7716_v1 }
0x1043   : > { %6993 = vmatmul.mubr.msk.f32.vlgmr.msra.gmra.mrb[38].mxu1 %vm2968_vm4, %v5844_v44  ;;  %v5902_v44 = vld [vmem:[%s8976_s2 + $0x1a0] sm:$0xf] }
0x1044   : > { %7016 = vmatprep.mubr.msk.f32.mxu1 %vm7715_vm3, %v7716_v1 }
0x104d   : > { %v4145_v46 = vpop.f32.mrb[36].mxu0 }
0x104e   : > { %v7013_v47 = vpop.f32.mrb[37].mxu0  ;;  %7015 = vmatpush3.msra.mxu1 %v4145_v46 }
0x104f   : > { %7017 = vmatmul.mubr.msk.f32.vlgmr.msra.gmra.mrb[40].mxu1 %vm2968_vm4, %v5866_v45  ;;  %7617 = vmatprep.subr.bf16.mxu1 %v7714_v59  ;;  %v5908_v47 = vld [vmem:[%s8975_s1 + $0xd80] sm:$0xff] }
0x1050   : > { %7035 = vmatprep.mubr.msk.f32.mxu1 %vm7715_vm3, %v7716_v1  ;;  %7619 = vmatpush3.bf16.msra.mxu1 %v7618_v50  ;;  %v7648_v50 = vpack.c.bf16 %v5909_v48, %v5908_v47 }
0x1051   : > { %7620 = vmatprep.subr.bf16.mxu1 %v7714_v59 }
0x1054   : > { %7622 = vmatpush3.bf16.msra.mxu1 %v7621_v53  ;;  %v5910_v53 = vld [vmem:[%s8975_s1 + $0xd90] sm:$0xff] }
0x1055   : > { %7623 = vmatprep.subr.bf16.mxu1 %v7714_v59  ;;  %v7651_v55 = vpack.c.bf16 %v5911_v54, %v5910_v53 }
0x1058   : > { %7625 = vmatpush3.bf16.msra.mxu1 %v7624_v56  ;;  %v5916_v56 = vld [vmem:[%s8975_s1 + $0xe10] sm:$0xff] }
0x1059   : > { %7626 = vmatprep.subr.bf16.mxu1 %v7714_v59  ;;  %v7657_v60 = vpack.c.bf16 %v5917_v2, %v5916_v56 }
0x105c   : > { %7628 = vmatpush3.bf16.msra.mxu1 %v7627_v61 }
0x105d   : > { %7635 = vmatprep.subr.bf16.mxu1 %v7714_v59 }
0x1112   : > { %v3991_v62 = vpop.f32.mrb[36].mxu1 }
0x1113   : > { %v6989_v63 = vpop.f32.mrb[37].mxu1 }
0x1116   : > { %v4064_v0 = vpop.f32.mrb[38].mxu1 }
0x1117   : > { %v4065_v3 = vadd.f32 %v4064_v0, %v3991_v62  ;;  %v6994_v4 = vpop.f32.mrb[39].mxu1  ;;  %v5907_v62 = vld [vmem:[%s8977_s3 + $0x8] ss:$0 sm:$0xff] }
0x1122   : > { %v4218_v5 = vpop.f32.mrb[40].mxu1 }
0x1123   : > { %v4222_v7 = vadd.f32 %v4218_v5, %v4065_v3  ;;  %v7018_v8 = vpop.f32.mrb[41].mxu1  ;;  %v5924_v5 = vld [vmem:[%s8975_s1 + $0xe80] sm:$0xff] }
0x1125   : > { %v4231_v9 = vadd.f32 %v5870_v6, %v4222_v7  ;;  %v5925_v6 = vld [vmem:[%s8975_s1 + $0xe88] sm:$0xff]  ;;  %v5918_v7 = vld [vmem:[%s8976_s2 + $0x1c0] sm:$0xf] }
0x1126   : > { %v7660_v8 = vpack.c.bf16 %v5925_v6, %v5924_v5 }
0x1127   : > { %v4232_v10 = vadd.f32 %v4231_v9, %v8542_v22  ;;  %v5891_v22 = vld [vmem:[%s8975_s1 + $0xc98] sm:$0xff] }
0x1128   : > { %v7639_v15 = vpack.c.bf16 %v5891_v22, %v5890_v14  ;;  %v7663_v22 = vpack.c.bf16 %v5927_v12, %v5926_v11 }
0x1129   : > { %v4233_v57 = vmax.f32 %v4232_v10, 0.0 }
0x112b   : > { %7036 = vmatmul.mubr.msk.f32.vlgmr.msra.gmra.mrb[42].mxu1 %vm782_vm1, %v4233_v57  ;;  %v5912_v57 = vld [vmem:[%s8976_s2 + $0x1b0] sm:$0xf] }
0x112c   : > { %7062 = vmatprep.mubr.msk.f32.mxu1 %vm7715_vm3, %v7716_v1  ;;  %7637 = vmatpush3.bf16.msra.mxu1 %v7636_v13 }
0x112d   : > { %7638 = vmatprep.subr.bf16.mxu1 %v7714_v59 }
0x1130   : > { %7640 = vmatpush3.bf16.msra.mxu1 %v7639_v15 }
0x1131   : > { %7070 = vmatprep.subr.mxu1 %v7716_v1 }
0x11fe   : > { %v4314_v19 = vpop.f32.mrb[42].mxu1 }
0x11ff   : > { %v7037_v20 = vpop.f32.mrb[43].mxu1  ;;  %7039 = vmatpush3.msra.mxu0 %v4314_v19  ;;  %v5928_v19 = vld [vmem:[%s8976_s2 + $0x1d0] sm:$0xf] }
0x1200   : > { %7041 = vmatmul.mubr.msk.f32.vlgmr.msra.gmra.mrb[38].mxu0 %vm2968_vm4, %v5879_v17  ;;  %7629 = vmatprep.subr.bf16.mxu0 %v7714_v59 }
0x1201   : > { %7631 = vmatpush3.bf16.msra.mxu0 %v7630_v18  ;;  %7051 = vmatprep.mubr.msk.f32.mxu0 %vm7715_vm3, %v7716_v1 }
0x1202   : > { %7632 = vmatprep.subr.bf16.mxu0 %v7714_v59 }
0x1205   : > { %7634 = vmatpush3.bf16.msra.mxu0 %v7633_v24  ;;  %v5935_v24 = vld [vmem:[%s8975_s1 + $0xf88] sm:$0xff] }
0x1206   : > { %7065 = vmatprep.subr.mxu0 %v7716_v1 }
0x12d3   : > { %v8814_v25 = vpop.f32.mrb[38].mxu0 }
0x12d4   : > { %7063 = vmatmul.mubr.msk.f32.vlgmr.msra.gmra.mrb[44].mxu1 %vm408_vm0, %v8814_v25  ;;  %v7042_v26 = vpop.f32.mrb[39].mxu0  ;;  %7052 = vmatmul.mubr.msk.f32.vlgmr.msra.gmra.mrb[40].mxu0 %vm408_vm0, %v8814_v25 }
0x12d5   : > { %7067 = vmatprep.mubr.msk.f32.mxu0 %vm7715_vm3, %v7716_v1  ;;  %7072 = vmatprep.mubr.msk.f32.mxu1 %vm7715_vm3, %v7716_v1  ;;  %v7666_v26 = vpack.c.bf16 %v5935_v24, %v5934_v23 }
0x13a7   : > { %v4544_v31 = vpop.f32.mrb[44].mxu1  ;;  %v4467_v32 = vpop.f32.mrb[40].mxu0 }
0x13a8   : > { %7066 = vmatpush3.msk.msra.mxu0 %vm4552_vm5, %v4544_v31  ;;  %v7053_v36 = vpop.f32.mrb[41].mxu0  ;;  %v7064_v37 = vpop.f32.mrb[45].mxu1  ;;  %7071 = vmatpush3.msk.msra.mxu1 %vm4552_vm5, %v4467_v32 }
0x13a9   : > { %7641 = vmatprep.subr.bf16.mxu0 %v7714_v59  ;;  %7068 = vmatmul.mubr.msk.f32.vlgmr.msra.gmra.mrb[42].mxu0 %vm4548_vm6, %v5892_v29 }
0x13aa   : > { %7643 = vmatpush3.bf16.msra.mxu0 %v7642_v30  ;;  %7073 = vmatmul.mubr.msk.f32.vlgmr.msra.gmra.mrb[46].mxu1 %vm4548_vm6, %v5886_v33  ;;  %v5933_v30 = vld [vmem:[%s8977_s3 + $0x9] ss:$0 sm:$0xff] }
0x13ab   : > { %7644 = vmatprep.subr.bf16.mxu0 %v7714_v59  ;;  %7083 = vmatprep.mubr.msk.f32.mxu0 %vm7715_vm3, %v7716_v1 }
0x13ac   : > { %7086 = vmatprep.subr.mxu1 %v7716_v1  ;;  %7088 = vmatprep.mubr.msk.f32.mxu1 %vm7715_vm3, %v7716_v1 }
0x13ae   : > { %7646 = vmatpush3.bf16.msra.mxu0 %v7645_v38 }
0x13af   : > { %7653 = vmatprep.subr.bf16.mxu0 %v7714_v59 }
0x13b1   : > { %7084 = vmatmul.mubr.msk.f32.vlgmr.msra.gmra.mrb[44].mxu0 %vm408_vm0, %v8814_v25 }
0x13b2   : > { %7110 = vmatprep.mubr.msk.f32.mxu0 %vm7715_vm3, %v7716_v1  ;;  %7655 = vmatpush3.bf16.msra.mxu0 %v7654_v52 }
0x13b3   : > { %7656 = vmatprep.subr.bf16.mxu0 %v7714_v59 }
0x13b6   : > { %7658 = vmatpush3.bf16.msra.mxu0 %v7657_v60 }
0x13b7   : > { %7118 = vmatprep.subr.mxu0 %v7716_v1 }
0x147c   : > { %v4622_v39 = vpop.f32.mrb[42].mxu0 }
0x147d   : > { %v7069_v40 = vpop.f32.mrb[43].mxu0  ;;  %v4698_v41 = vpop.f32.mrb[46].mxu1 }
0x147e   : > { %v4699_v42 = vadd.f32 %v4698_v41, %v4622_v39  ;;  %v7074_v43 = vpop.f32.mrb[47].mxu1 }
0x1484   : > { %v4775_v45 = vpop.f32.mrb[44].mxu0 }
0x1485   : > { %v7085_v46 = vpop.f32.mrb[45].mxu0  ;;  %7087 = vmatpush3.msk.msra.mxu1 %vm4552_vm5, %v4775_v45 }
0x1486   : > { %7089 = vmatmul.mubr.msk.f32.vlgmr.msra.gmra.mrb[48].mxu1 %vm4548_vm6, %v5902_v44  ;;  %7647 = vmatprep.subr.bf16.mxu1 %v7714_v59 }
0x1487   : > { %7099 = vmatprep.mubr.msk.f32.mxu1 %vm7715_vm3, %v7716_v1  ;;  %7649 = vmatpush3.bf16.msra.mxu1 %v7648_v50 }
0x1488   : > { %7650 = vmatprep.subr.bf16.mxu1 %v7714_v59 }
0x148b   : > { %7652 = vmatpush3.bf16.msra.mxu1 %v7651_v55 }
0x148c   : > { %7113 = vmatprep.subr.mxu1 %v7716_v1 }
0x1559   : > { %v4851_v61 = vpop.f32.mrb[48].mxu1 }
0x155a   : > { %v4855_v63 = vadd.f32 %v4851_v61, %v4699_v42  ;;  %v7090_v0 = vpop.f32.mrb[49].mxu1 }
0x155c   : > { %v4864_v3 = vadd.f32 %v5907_v62, %v4855_v63 }
0x155e   : > { %v4865_v4 = vmax.f32 %v4864_v3, 0.0 }
0x1560   : > { %7100 = vmatmul.mubr.msk.f32.vlgmr.msra.gmra.mrb[50].mxu1 %vm408_vm0, %v4865_v4  ;;  %7111 = vmatmul.mubr.msk.f32.vlgmr.msra.gmra.mrb[46].mxu0 %vm408_vm0, %v4865_v4 }
0x1561   : > { %7115 = vmatprep.mubr.msk.f32.mxu1 %vm7715_vm3, %v7716_v1  ;;  %7120 = vmatprep.mubr.msk.f32.mxu0 %vm7715_vm3, %v7716_v1 }
0x1633   : > { %v4942_v9 = vpop.f32.mrb[50].mxu1  ;;  %v5019_v10 = vpop.f32.mrb[46].mxu0 }
0x1634   : > { %v7101_v13 = vpop.f32.mrb[51].mxu1  ;;  %v7112_v14 = vpop.f32.mrb[47].mxu0  ;;  %7114 = vmatpush3.msk.msra.mxu1 %vm4552_vm5, %v5019_v10  ;;  %7119 = vmatpush3.msk.msra.mxu0 %vm4552_vm5, %v4942_v9 }
0x1635   : > { %7659 = vmatprep.subr.bf16.mxu1 %v7714_v59  ;;  %7116 = vmatmul.mubr.msk.f32.vlgmr.msra.gmra.mrb[52].mxu1 %vm4548_vm6, %v5918_v7 }
0x1636   : > { %7661 = vmatpush3.bf16.msra.mxu1 %v7660_v8  ;;  %7121 = vmatmul.mubr.msk.f32.vlgmr.msra.gmra.mrb[48].mxu0 %vm4548_vm6, %v5912_v57 }
0x1637   : > { %7662 = vmatprep.subr.bf16.mxu1 %v7714_v59  ;;  %7131 = vmatprep.mubr.msk.f32.mxu1 %vm7715_vm3, %v7716_v1 }
0x1638   : > { %7134 = vmatprep.subr.mxu0 %v7716_v1  ;;  %7136 = vmatprep.mubr.msk.f32.mxu0 %vm7715_vm3, %v7716_v1 }
0x163a   : > { %7664 = vmatpush3.bf16.msra.mxu1 %v7663_v22 }
0x163b   : > { %7150 = vmatprep.subr.mxu1 %v7716_v1 }
0x163d   : > { %7132 = vmatmul.mubr.msk.f32.vlgmr.msra.gmra.mrb[54].mxu1 %vm408_vm0, %v4865_v4 }
0x163e   : > { %7152 = vmatprep.mubr.msk.f32.mxu1 %vm7715_vm3, %v7716_v1 }
0x1708   : > { %v5095_v15 = vpop.f32.mrb[52].mxu1 }
0x1709   : > { %v7117_v58 = vpop.f32.mrb[53].mxu1  ;;  %v5171_v16 = vpop.f32.mrb[48].mxu0 }
0x170a   : > { %v5172_v17 = vadd.f32 %v5171_v16, %v5095_v15  ;;  %v7122_v18 = vpop.f32.mrb[49].mxu0 }
0x1710   : > { %v5248_v20 = vpop.f32.mrb[54].mxu1 }
0x1711   : > { %v7133_v21 = vpop.f32.mrb[55].mxu1  ;;  %7135 = vmatpush3.msk.msra.mxu0 %vm4552_vm5, %v5248_v20 }
0x1712   : > { %7137 = vmatmul.mubr.msk.f32.vlgmr.msra.gmra.mrb[50].mxu0 %vm4548_vm6, %v5928_v19  ;;  %7665 = vmatprep.subr.bf16.mxu0 %v7714_v59 }
0x1713   : > { %7147 = vmatprep.mubr.msk.f32.mxu0 %vm7715_vm3, %v7716_v1  ;;  %7667 = vmatpush3.bf16.msra.mxu0 %v7666_v26  ;;  %v5937_v1 = vld [vmem:[%s8975_s1 + $0xf98] sm:$0xff] }
0x1714   : > { %7668 = vmatprep.subr.bf16.mxu0 %v7714_v59  ;;  %v7669_v28 = vpack.c.bf16 %v5937_v1, %v5936_v27 }
0x1717   : > { %7670 = vmatpush3.bf16.msra.mxu0 %v7669_v28 }
0x17e5   : > { %v5324_v29 = vpop.f32.mrb[50].mxu0 }
0x17e6   : > { %v5328_v31 = vadd.f32 %v5324_v29, %v5172_v17  ;;  %v7138_v32 = vpop.f32.mrb[51].mxu0 }
0x17e8   : > { %v5337_v33 = vadd.f32 %v5933_v30, %v5328_v31 }
0x17ea   : > { %v5338_v59 = vadd.f32 %v5337_v33, %v8814_v25 }
0x17ec   : > { %v5339_v34 = vmax.f32 %v5338_v59, 0.0 }
0x17ee   : > { %7148 = vmatmul.mubr.msk.f32.vlgmr.msra.gmra.mrb[52].mxu0 %vm408_vm0, %v5339_v34 }
0x18c1   : > { %v5416_v36 = vpop.f32.mrb[52].mxu0 }
0x18c2   : > { %v7149_v37 = vpop.f32.mrb[53].mxu0  ;;  %7151 = vmatpush3.msk.msra.mxu1 %vm4552_vm5, %v5416_v36 }
0x18c3   : > { %7153 = vmatmul.mubr.msk.f32.vlgmr.msra.gmra.mrb[56].mxu1 %vm4548_vm6, %v5938_v35 }
0x1996   : > { %v5492_v25 = vpop.f32.mrb[56].mxu1 }
0x1997   : > { %5497 = vst.msk [vmem:[%s195_s6] sm:$0x3] %vm5496_vm7, %v5492_v25  ;;  %v7154_v38 = vpop.f32.mrb[57].mxu1 }
0x1998 PF: > { %s14_s15 = sadd.s32 1, %s7712_s15  }
0x1999   : > { %p11_p4 = scmp.ge.s32.totalorder %s14_s15, 4  }
0x199b   :  { %13 = sbr.rel (!%p11_p4) target bundleno = 1 (0x1), region = 137 }

</bundles_post_ra>
